<compile_context>
chip_gen: v5e
topology: v5e:2x2
jax: 0.10.0
libtpu: 0.0.40
codegen_flags: <defaults>
</compile_context>

<pallas_src>
import functools
import math

import numpy as np

import jax
import jax.numpy as jnp
from jax import lax
from jax.experimental import pallas as pl
from jax.experimental.pallas import tpu as pltpu


def to_mel(hz):
    return 2595 * np.log10(1 + hz / 700)


def to_hz(mel):
    return 700 * (10 ** (mel / 2595) - 1)


def _cdiv(a, b):
    return -(-a // b)


def _round_up(x, m):
    return _cdiv(x, m) * m


def make_sincconv_params(out_channels, kernel_size, sample_rate=16000,
                         min_low_hz=50, min_band_hz=50):
    """Deterministic parameter init, mirroring SincConv_fast.__init__."""
    if kernel_size % 2 == 0:
        kernel_size += 1
    low_hz = 30
    high_hz = sample_rate / 2 - (min_low_hz + min_band_hz)
    mel = np.linspace(to_mel(low_hz), to_mel(high_hz), out_channels + 1)
    hz = to_hz(mel)
    low_hz_ = jnp.asarray(hz[:-1], dtype=jnp.float32).reshape(-1, 1)       # (C, 1)
    band_hz_ = jnp.asarray(np.diff(hz), dtype=jnp.float32).reshape(-1, 1)  # (C, 1)

    n_lin = jnp.linspace(0.0, kernel_size / 2 - 1, num=int(kernel_size / 2),
                         dtype=jnp.float32)
    window_ = 0.54 - 0.46 * jnp.cos(2 * math.pi * n_lin / kernel_size)     # (K//2,)
    n = (kernel_size - 1) / 2.0
    n_ = (2 * math.pi * jnp.arange(-n, 0, dtype=jnp.float32).reshape(1, -1)
          / sample_rate)                                                   # (1, K//2)
    return dict(kernel_size=kernel_size, sample_rate=sample_rate,
                min_low_hz=min_low_hz, min_band_hz=min_band_hz,
                low_hz_=low_hz_, band_hz_=band_hz_, window_=window_, n_=n_)


def build_filters(p):
    """Forward-pass filter construction (small C x K math; plain-JAX glue)."""
    low = p["min_low_hz"] + jnp.abs(p["low_hz_"])                          # (C, 1)
    high = jnp.clip(low + p["min_band_hz"] + jnp.abs(p["band_hz_"]),
                    p["min_low_hz"], p["sample_rate"] / 2)                 # (C, 1)
    band = (high - low)[:, 0]                                              # (C,)
    f_t_low = jnp.matmul(low, p["n_"])                                     # (C, K//2)
    f_t_high = jnp.matmul(high, p["n_"])                                   # (C, K//2)
    band_pass_left = ((jnp.sin(f_t_high) - jnp.sin(f_t_low))
                      / (p["n_"] / 2)) * p["window_"]                      # (C, K//2)
    band_pass_center = 2 * band.reshape(-1, 1)                             # (C, 1)
    band_pass_right = jnp.flip(band_pass_left, axis=1)                     # (C, K//2)
    band_pass = jnp.concatenate(
        [band_pass_left, band_pass_center, band_pass_right], axis=1)       # (C, K)
    band_pass = band_pass / (2 * band[:, None])
    return band_pass.astype(jnp.float32)                                   # (C, K)


# ----------------------------------------------------------------------------
# Pallas kernels: one lane-aligned output tile (1, C_pad, TL) per grid step.
# ----------------------------------------------------------------------------

_TAP_CHUNK = 16      # im2col rows written per chunk: one full bf16 (16, 128)
                     # sublane tile, so scratch stores stay tile-aligned for
                     # both f32 and bf16 operands.
_STATIC_CHUNKS = 4   # <= 64 taps: fully unroll the chunk loop at trace time.


def _conv1d_tile_mxu_kernel(x_ref, f_ref, o_ref, patches_ref):
    """Per-tile im2col into a VMEM scratch + one MXU matmul (default path).

    x_ref:       (1, 1, N_pad)   padded waveform of batch element b (resident)
    f_ref:       (C_pad, K_pad)  filter bank, zero-padded taps (resident)
    o_ref:       (1, C_pad, TL)  one lane-dense output tile
    patches_ref: (K_pad, TL)     scratch; patches[r, t] = x[j*TL + r + t]

    Replaces the previous K-way jnp.concatenate im2col: the scratch is filled
    in 16-tap, sublane-aligned chunks with a bounded unroll, which keeps code
    size and vreg live ranges flat even for production SincNet (K = 251), and
    the matmul's RHS is TL lanes wide so the weight load is amortized.
    """
    k_pad = f_ref.shape[1]
    tl = o_ref.shape[2]
    j = pl.program_id(1)
    start = pl.multiple_of(j * tl, 128)

    def fill_chunk(c):
        base = c * _TAP_CHUNK
        # One halo-window load per chunk; the 16 tap shifts are static lane
        # slices of that window.  Padded taps (>= K) still hold valid shifted
        # data but meet zero filter columns, so they contribute exactly 0.
        w = x_ref[0, :, pl.ds(pl.multiple_of(start + base, _TAP_CHUNK),
                              tl + _TAP_CHUNK - 1)]                # (1, TL+15)
        rows = jnp.concatenate(
            [w[:, t:t + tl] for t in range(_TAP_CHUNK)], axis=0)   # (16, TL)
        patches_ref[pl.ds(base, _TAP_CHUNK), :] = rows

    n_chunks = k_pad // _TAP_CHUNK
    if n_chunks <= _STATIC_CHUNKS:
        for c in range(n_chunks):          # small K: static, fully unrolled
            fill_chunk(c)
    else:                                  # large K: bounded unroll
        def body(c, carry):
            fill_chunk(c)
            return carry
        lax.fori_loop(0, n_chunks, body, 0, unroll=2)

    out = jnp.dot(f_ref[...], patches_ref[...],
                  preferred_element_type=jnp.float32)              # (C_pad, TL)
    o_ref[...] = out[None].astype(o_ref.dtype)


def _conv1d_tile_vpu_kernel(x_ref, f_ref, o_ref, *, k_taps):
    """VPU shift-and-accumulate fallback for tiny C*K (< 256); f32 only.

    Per the review, the sublane broadcast of the halo window is hoisted out of
    the tap loop (JAX does not CSE broadcast_in_dim), so only one
    (1, W) -> (C_pad, W) broadcast hits the XLU per tile instead of K.
    """
    c_pad = f_ref.shape[0]
    tl = o_ref.shape[2]
    j = pl.program_id(1)
    start = pl.multiple_of(j * tl, 128)
    width = tl + k_taps - 1
    xw = x_ref[0, :, pl.ds(start, width)]                          # (1, W)
    xwb = jnp.broadcast_to(xw, (c_pad, width))                     # hoisted
    f = f_ref[...]
    acc = jnp.zeros((c_pad, tl), jnp.float32)
    for k in range(k_taps):                                        # static, tiny K
        acc = acc + f[:, k:k + 1] * xwb[:, k:k + tl]
    o_ref[...] = acc[None].astype(o_ref.dtype)


# ----------------------------------------------------------------------------
# Wrapper
# ----------------------------------------------------------------------------

def _default_mxu_compute_dtype():
    """Operand dtype for the MXU path: bf16 on v6e/v7x, f32 on v5e and older.

    bf16 operands halve the waveform HBM/DMA bytes and feed the 256x256 bf16
    MXU at full rate on v6e/v7x; accumulation stays f32.  v5e and older keep
    the exact-f32 operands (no bf16 VPU/EUP, reference semantics are f32).
    """
    try:
        kind = jax.devices()[0].device_kind.lower()
    except Exception:
        return jnp.float32
    if any(tag in kind for tag in ("v2", "v3", "v4", "v5")):
        return jnp.float32
    return jnp.bfloat16


def sinc_conv_forward(waveforms, params, *, tile_l=2048, use_mxu=None,
                      compute_dtype=None, return_padded=False,
                      vmem_limit_bytes=32 * 1024 * 1024):
    """waveforms: (B, 1, N) float32 -> (B, C_out, N - K + 1) float32."""
    filters = build_filters(params)                           # (C, K) f32
    B, c_in, N = waveforms.shape
    assert c_in == 1, "SincConv only supports one input channel"
    C, K = filters.shape
    assert N >= K, "input must be at least kernel_size samples long"
    L = N - K + 1
    # TODO(synk): stride/padding/dilation other than the module defaults
    # (1, 0, 1) are not implemented in the Pallas path.

    C_pad = _round_up(C, 8)                    # sublane-aligned channel count
    if use_mxu is None:
        # Review: the MXU wins from roughly C_pad*K >= 256 (the MACs move to
        # the otherwise-idle vector-extended slot), so it is the default even
        # for small filter banks such as C=16, K=33.
        use_mxu = (C_pad * K) >= 256
    if not use_mxu:
        compute_dtype = jnp.float32            # exact-f32 VALU path
    elif compute_dtype is None:
        compute_dtype = _default_mxu_compute_dtype()
    itemsize = np.dtype(compute_dtype).itemsize

    K_pad = _round_up(K, _TAP_CHUNK) if use_mxu else K

    if not use_mxu:
        # Keep the live accumulator (C_pad x TL f32) within ~32 vregs.
        tile_l = min(tile_l, max(128, ((32 * 1024) // C_pad) // 128 * 128))

    # --- lane/sublane-friendly padded geometry -------------------------------
    num_tiles = max(1, _cdiv(L, tile_l))
    # v7x has two TensorCores: keep the parallel grid size even when possible.
    if (B * num_tiles) % 2 != 0 and L > 128:
        num_tiles += 1
    TL = _round_up(_cdiv(L, num_tiles), 128)   # output tile, multiple of 128
    L_pad = TL * num_tiles                     # lane-dense padded output length
    N_pad = _round_up(L_pad + K_pad - 1, 128)  # waveform + halo for last tile

    # Resident-block capacity check (review, v7x): the whole padded waveform
    # of one batch element stays in VMEM across the L-tile axis.
    resident_bytes = (2 * N_pad * itemsize                    # waveform (x2 buf)
                      + 2 * C_pad * K_pad * itemsize          # filter bank
                      + 2 * C_pad * TL * 4                    # f32 output tile
                      + (K_pad * TL * itemsize if use_mxu else 0))
    if resident_bytes > vmem_limit_bytes - (8 << 20):
        # TODO(synk): for multi-minute audio, switch the waveform input to a
        # per-tile halo window (pl.ANY + manual make_async_copy double buffer).
        raise ValueError(
            f"SincConv Pallas kernel needs ~{resident_bytes / 2**20:.1f} MiB "
            f"of VMEM (limit {vmem_limit_bytes / 2**20:.0f} MiB); shorten the "
            f"waveform or lower tile_l.")

    # Pad + cast fuse into one XLA op each; the filter bank is tiny.
    x_pad = jnp.pad(waveforms, ((0, 0), (0, 0), (0, N_pad - N))
                    ).astype(compute_dtype)
    f_pad = jnp.pad(filters, ((0, C_pad - C), (0, K_pad - K))
                    ).astype(compute_dtype)

    if use_mxu:
        kernel = _conv1d_tile_mxu_kernel
        scratch_shapes = [pltpu.VMEM((K_pad, TL), compute_dtype)]
    else:
        kernel = functools.partial(_conv1d_tile_vpu_kernel, k_taps=K)
        scratch_shapes = []

    out = pl.pallas_call(
        kernel,
        out_shape=jax.ShapeDtypeStruct((B, C_pad, L_pad), jnp.float32),
        grid_spec=pltpu.PrefetchScalarGridSpec(
            num_scalar_prefetch=0,
            grid=(B, num_tiles),
            in_specs=[
                # Full padded waveform of batch element b; block index constant
                # over the L-tile axis -> resident, no per-tile re-DMA.
                pl.BlockSpec((1, 1, N_pad), lambda b, j: (b, 0, 0)),
                # Filter bank; constant index -> resident across the grid.
                pl.BlockSpec((C_pad, K_pad), lambda b, j: (0, 0)),
            ],
            out_specs=pl.BlockSpec((1, C_pad, TL), lambda b, j: (b, 0, j)),
            scratch_shapes=scratch_shapes,
        ),
        compiler_params=pltpu.CompilerParams(
            # Both axes parallel: megacore sharding on v7x even for B=1..2.
            dimension_semantics=("parallel", "parallel"),
            vmem_limit_bytes=vmem_limit_bytes),
    )(x_pad, f_pad)

    if return_padded:
        return out            # (B, C_pad, L_pad): skips the post-slice HBM copy
    return out[:, :C, :L]


def _reference_forward(waveforms, params, compute_dtype=jnp.float32):
    """Plain-XLA reference.  If compute_dtype != f32, the operands are rounded
    to that dtype first (mirroring the kernel's bf16-operand / f32-accumulate
    MXU path) while the convolution itself runs in full f32 precision."""
    filters = build_filters(params)                           # (C, K) f32
    if np.dtype(compute_dtype) != np.dtype(np.float32):
        filters = filters.astype(compute_dtype).astype(jnp.float32)
        waveforms = waveforms.astype(compute_dtype).astype(jnp.float32)
    return jax.lax.conv_general_dilated(
        waveforms, filters[:, None, :], window_strides=(1,), padding="VALID",
        dimension_numbers=("NCH", "OIH", "NCH"),
        precision=jax.lax.Precision.HIGHEST)


if __name__ == "__main__":
    out_channels = 16
    kernel_size = 33            # odd (even sizes get +1 in the module)
    sample_rate = 16000
    batch, n_samples = 2, 256

    params = make_sincconv_params(out_channels, kernel_size, sample_rate)
    key = jax.random.PRNGKey(0)
    waveforms = jax.random.normal(key, (batch, 1, n_samples), dtype=jnp.float32)
    L = n_samples - params["kernel_size"] + 1

    ref = _reference_forward(waveforms, params)

    # (1) Strict semantics check: exact-f32 VPU path vs the f32 reference.
    out_vpu = jax.block_until_ready(
        sinc_conv_forward(waveforms, params, use_mxu=False,
                          compute_dtype=jnp.float32))
    assert out_vpu.shape == (batch, out_channels, L)
    np.testing.assert_allclose(np.asarray(out_vpu), np.asarray(ref),
                               rtol=2e-4, atol=2e-4)

    # (2) Default path (MXU; bf16 operands on v6e/v7x, f32 elsewhere).
    out = jax.block_until_ready(sinc_conv_forward(waveforms, params))
    assert out.shape == (batch, out_channels, L)
    cd = _default_mxu_compute_dtype()           # mirrors the wrapper's auto pick
    if np.dtype(cd) == np.dtype(jnp.bfloat16):
        # Compare against a reference fed the same bf16-rounded operands, so
        # the check isolates kernel correctness from the deliberate operand-
        # precision choice (only the f32 accumulation order differs).
        ref_q = _reference_forward(waveforms, params, compute_dtype=cd)
        np.testing.assert_allclose(np.asarray(out), np.asarray(ref_q),
                                   rtol=1e-3, atol=1e-3)
    else:
        # f32 operands: margin for the MXU's multi-pass f32 contraction; the
        # strict 2e-4 semantic check is carried by (1) above.
        np.testing.assert_allclose(np.asarray(out), np.asarray(ref),
                                   rtol=2e-2, atol=2e-2)

    print("KERNEL_OK")
</pallas_src>

<mosaic_0001>
module attributes {stable_mosaic.version = 11 : i64} {
  func.func @_conv1d_tile_vpu_kernel(%arg0: i32, %arg1: i32, %arg2: memref<1x1x384xf32, #tpu.memory_space<vmem>>, %arg3: memref<16x33xf32, #tpu.memory_space<vmem>>, %arg4: memref<1x16x256xf32, #tpu.memory_space<vmem>>) attributes {dimension_semantics = [#tpu.dimension_semantics<parallel>, #tpu.dimension_semantics<parallel>], iteration_bounds = array<i64: 2, 1>, scalar_prefetch = 0 : i64, scratch_operands = 0 : i64, tpu.core_type = #tpu.core_type<tc>, window_params = [{transform_indices = @transform_0, window_bounds = array<i64: 1, 1, 384>}, {pipeline_mode = #tpu.pipeline_mode<synchronous>, transform_indices = @transform_1, window_bounds = array<i64: 16, 33>}, {transform_indices = @transform_2, window_bounds = array<i64: 1, 16, 256>}]} {
    %c256_i32 = arith.constant 256 : i32
    %0 = arith.muli %arg1, %c256_i32 : i32
    %1 = tpu.assume_multiple %0, 128 : i32
    %c0 = arith.constant 0 : index
    %c0_0 = arith.constant 0 : index
    %2 = arith.index_cast %1 : i32 to index
    %3 = vector.load %arg2[%c0, %c0_0, %2] : memref<1x1x384xf32, #tpu.memory_space<vmem>>, vector<1x1x288xf32>
    %4 = vector.shape_cast %3 : vector<1x1x288xf32> to vector<1x288xf32>
    %5 = vector.shape_cast %4 : vector<1x288xf32> to vector<1x288xf32>
    %6 = vector.broadcast %5 : vector<1x288xf32> to vector<16x288xf32>
    %c0_1 = arith.constant 0 : index
    %c0_2 = arith.constant 0 : index
    %7 = vector.load %arg3[%c0_1, %c0_2] : memref<16x33xf32, #tpu.memory_space<vmem>>, vector<16x33xf32>
    %cst = arith.constant 0.000000e+00 : f32
    %8 = vector.broadcast %cst : f32 to vector<16x256xf32>
    %9 = vector.extract_strided_slice %7 {offsets = [0, 0], sizes = [16, 1], strides = [1, 1]} : vector<16x33xf32> to vector<16x1xf32>
    %10 = vector.extract_strided_slice %6 {offsets = [0, 0], sizes = [16, 256], strides = [1, 1]} : vector<16x288xf32> to vector<16x256xf32>
    %11 = vector.broadcast %9 : vector<16x1xf32> to vector<16x256xf32>
    %12 = arith.mulf %11, %10 : vector<16x256xf32>
    %13 = arith.addf %8, %12 : vector<16x256xf32>
    %14 = vector.extract_strided_slice %7 {offsets = [0, 1], sizes = [16, 1], strides = [1, 1]} : vector<16x33xf32> to vector<16x1xf32>
    %15 = vector.extract_strided_slice %6 {offsets = [0, 1], sizes = [16, 256], strides = [1, 1]} : vector<16x288xf32> to vector<16x256xf32>
    %16 = vector.broadcast %14 : vector<16x1xf32> to vector<16x256xf32>
    %17 = arith.mulf %16, %15 : vector<16x256xf32>
    %18 = arith.addf %13, %17 : vector<16x256xf32>
    %19 = vector.extract_strided_slice %7 {offsets = [0, 2], sizes = [16, 1], strides = [1, 1]} : vector<16x33xf32> to vector<16x1xf32>
    %20 = vector.extract_strided_slice %6 {offsets = [0, 2], sizes = [16, 256], strides = [1, 1]} : vector<16x288xf32> to vector<16x256xf32>
    %21 = vector.broadcast %19 : vector<16x1xf32> to vector<16x256xf32>
    %22 = arith.mulf %21, %20 : vector<16x256xf32>
    %23 = arith.addf %18, %22 : vector<16x256xf32>
    %24 = vector.extract_strided_slice %7 {offsets = [0, 3], sizes = [16, 1], strides = [1, 1]} : vector<16x33xf32> to vector<16x1xf32>
    %25 = vector.extract_strided_slice %6 {offsets = [0, 3], sizes = [16, 256], strides = [1, 1]} : vector<16x288xf32> to vector<16x256xf32>
    %26 = vector.broadcast %24 : vector<16x1xf32> to vector<16x256xf32>
    %27 = arith.mulf %26, %25 : vector<16x256xf32>
    %28 = arith.addf %23, %27 : vector<16x256xf32>
    %29 = vector.extract_strided_slice %7 {offsets = [0, 4], sizes = [16, 1], strides = [1, 1]} : vector<16x33xf32> to vector<16x1xf32>
    %30 = vector.extract_strided_slice %6 {offsets = [0, 4], sizes = [16, 256], strides = [1, 1]} : vector<16x288xf32> to vector<16x256xf32>
    %31 = vector.broadcast %29 : vector<16x1xf32> to vector<16x256xf32>
    %32 = arith.mulf %31, %30 : vector<16x256xf32>
    %33 = arith.addf %28, %32 : vector<16x256xf32>
    %34 = vector.extract_strided_slice %7 {offsets = [0, 5], sizes = [16, 1], strides = [1, 1]} : vector<16x33xf32> to vector<16x1xf32>
    %35 = vector.extract_strided_slice %6 {offsets = [0, 5], sizes = [16, 256], strides = [1, 1]} : vector<16x288xf32> to vector<16x256xf32>
    %36 = vector.broadcast %34 : vector<16x1xf32> to vector<16x256xf32>
    %37 = arith.mulf %36, %35 : vector<16x256xf32>
    %38 = arith.addf %33, %37 : vector<16x256xf32>
    %39 = vector.extract_strided_slice %7 {offsets = [0, 6], sizes = [16, 1], strides = [1, 1]} : vector<16x33xf32> to vector<16x1xf32>
    %40 = vector.extract_strided_slice %6 {offsets = [0, 6], sizes = [16, 256], strides = [1, 1]} : vector<16x288xf32> to vector<16x256xf32>
    %41 = vector.broadcast %39 : vector<16x1xf32> to vector<16x256xf32>
    %42 = arith.mulf %41, %40 : vector<16x256xf32>
    %43 = arith.addf %38, %42 : vector<16x256xf32>
    %44 = vector.extract_strided_slice %7 {offsets = [0, 7], sizes = [16, 1], strides = [1, 1]} : vector<16x33xf32> to vector<16x1xf32>
    %45 = vector.extract_strided_slice %6 {offsets = [0, 7], sizes = [16, 256], strides = [1, 1]} : vector<16x288xf32> to vector<16x256xf32>
    %46 = vector.broadcast %44 : vector<16x1xf32> to vector<16x256xf32>
    %47 = arith.mulf %46, %45 : vector<16x256xf32>
    %48 = arith.addf %43, %47 : vector<16x256xf32>
    %49 = vector.extract_strided_slice %7 {offsets = [0, 8], sizes = [16, 1], strides = [1, 1]} : vector<16x33xf32> to vector<16x1xf32>
    %50 = vector.extract_strided_slice %6 {offsets = [0, 8], sizes = [16, 256], strides = [1, 1]} : vector<16x288xf32> to vector<16x256xf32>
    %51 = vector.broadcast %49 : vector<16x1xf32> to vector<16x256xf32>
    %52 = arith.mulf %51, %50 : vector<16x256xf32>
    %53 = arith.addf %48, %52 : vector<16x256xf32>
    %54 = vector.extract_strided_slice %7 {offsets = [0, 9], sizes = [16, 1], strides = [1, 1]} : vector<16x33xf32> to vector<16x1xf32>
    %55 = vector.extract_strided_slice %6 {offsets = [0, 9], sizes = [16, 256], strides = [1, 1]} : vector<16x288xf32> to vector<16x256xf32>
    %56 = vector.broadcast %54 : vector<16x1xf32> to vector<16x256xf32>
    %57 = arith.mulf %56, %55 : vector<16x256xf32>
    %58 = arith.addf %53, %57 : vector<16x256xf32>
    %59 = vector.extract_strided_slice %7 {offsets = [0, 10], sizes = [16, 1], strides = [1, 1]} : vector<16x33xf32> to vector<16x1xf32>
    %60 = vector.extract_strided_slice %6 {offsets = [0, 10], sizes = [16, 256], strides = [1, 1]} : vector<16x288xf32> to vector<16x256xf32>
    %61 = vector.broadcast %59 : vector<16x1xf32> to vector<16x256xf32>
    %62 = arith.mulf %61, %60 : vector<16x256xf32>
    %63 = arith.addf %58, %62 : vector<16x256xf32>
    %64 = vector.extract_strided_slice %7 {offsets = [0, 11], sizes = [16, 1], strides = [1, 1]} : vector<16x33xf32> to vector<16x1xf32>
    %65 = vector.extract_strided_slice %6 {offsets = [0, 11], sizes = [16, 256], strides = [1, 1]} : vector<16x288xf32> to vector<16x256xf32>
    %66 = vector.broadcast %64 : vector<16x1xf32> to vector<16x256xf32>
    %67 = arith.mulf %66, %65 : vector<16x256xf32>
    %68 = arith.addf %63, %67 : vector<16x256xf32>
    %69 = vector.extract_strided_slice %7 {offsets = [0, 12], sizes = [16, 1], strides = [1, 1]} : vector<16x33xf32> to vector<16x1xf32>
    %70 = vector.extract_strided_slice %6 {offsets = [0, 12], sizes = [16, 256], strides = [1, 1]} : vector<16x288xf32> to vector<16x256xf32>
    %71 = vector.broadcast %69 : vector<16x1xf32> to vector<16x256xf32>
    %72 = arith.mulf %71, %70 : vector<16x256xf32>
    %73 = arith.addf %68, %72 : vector<16x256xf32>
    %74 = vector.extract_strided_slice %7 {offsets = [0, 13], sizes = [16, 1], strides = [1, 1]} : vector<16x33xf32> to vector<16x1xf32>
    %75 = vector.extract_strided_slice %6 {offsets = [0, 13], sizes = [16, 256], strides = [1, 1]} : vector<16x288xf32> to vector<16x256xf32>
    %76 = vector.broadcast %74 : vector<16x1xf32> to vector<16x256xf32>
    %77 = arith.mulf %76, %75 : vector<16x256xf32>
    %78 = arith.addf %73, %77 : vector<16x256xf32>
    %79 = vector.extract_strided_slice %7 {offsets = [0, 14], sizes = [16, 1], strides = [1, 1]} : vector<16x33xf32> to vector<16x1xf32>
    %80 = vector.extract_strided_slice %6 {offsets = [0, 14], sizes = [16, 256], strides = [1, 1]} : vector<16x288xf32> to vector<16x256xf32>
    %81 = vector.broadcast %79 : vector<16x1xf32> to vector<16x256xf32>
    %82 = arith.mulf %81, %80 : vector<16x256xf32>
    %83 = arith.addf %78, %82 : vector<16x256xf32>
    %84 = vector.extract_strided_slice %7 {offsets = [0, 15], sizes = [16, 1], strides = [1, 1]} : vector<16x33xf32> to vector<16x1xf32>
    %85 = vector.extract_strided_slice %6 {offsets = [0, 15], sizes = [16, 256], strides = [1, 1]} : vector<16x288xf32> to vector<16x256xf32>
    %86 = vector.broadcast %84 : vector<16x1xf32> to vector<16x256xf32>
    %87 = arith.mulf %86, %85 : vector<16x256xf32>
    %88 = arith.addf %83, %87 : vector<16x256xf32>
    %89 = vector.extract_strided_slice %7 {offsets = [0, 16], sizes = [16, 1], strides = [1, 1]} : vector<16x33xf32> to vector<16x1xf32>
    %90 = vector.extract_strided_slice %6 {offsets = [0, 16], sizes = [16, 256], strides = [1, 1]} : vector<16x288xf32> to vector<16x256xf32>
    %91 = vector.broadcast %89 : vector<16x1xf32> to vector<16x256xf32>
    %92 = arith.mulf %91, %90 : vector<16x256xf32>
    %93 = arith.addf %88, %92 : vector<16x256xf32>
    %94 = vector.extract_strided_slice %7 {offsets = [0, 17], sizes = [16, 1], strides = [1, 1]} : vector<16x33xf32> to vector<16x1xf32>
    %95 = vector.extract_strided_slice %6 {offsets = [0, 17], sizes = [16, 256], strides = [1, 1]} : vector<16x288xf32> to vector<16x256xf32>
    %96 = vector.broadcast %94 : vector<16x1xf32> to vector<16x256xf32>
    %97 = arith.mulf %96, %95 : vector<16x256xf32>
    %98 = arith.addf %93, %97 : vector<16x256xf32>
    %99 = vector.extract_strided_slice %7 {offsets = [0, 18], sizes = [16, 1], strides = [1, 1]} : vector<16x33xf32> to vector<16x1xf32>
    %100 = vector.extract_strided_slice %6 {offsets = [0, 18], sizes = [16, 256], strides = [1, 1]} : vector<16x288xf32> to vector<16x256xf32>
    %101 = vector.broadcast %99 : vector<16x1xf32> to vector<16x256xf32>
    %102 = arith.mulf %101, %100 : vector<16x256xf32>
    %103 = arith.addf %98, %102 : vector<16x256xf32>
    %104 = vector.extract_strided_slice %7 {offsets = [0, 19], sizes = [16, 1], strides = [1, 1]} : vector<16x33xf32> to vector<16x1xf32>
    %105 = vector.extract_strided_slice %6 {offsets = [0, 19], sizes = [16, 256], strides = [1, 1]} : vector<16x288xf32> to vector<16x256xf32>
    %106 = vector.broadcast %104 : vector<16x1xf32> to vector<16x256xf32>
    %107 = arith.mulf %106, %105 : vector<16x256xf32>
    %108 = arith.addf %103, %107 : vector<16x256xf32>
    %109 = vector.extract_strided_slice %7 {offsets = [0, 20], sizes = [16, 1], strides = [1, 1]} : vector<16x33xf32> to vector<16x1xf32>
    %110 = vector.extract_strided_slice %6 {offsets = [0, 20], sizes = [16, 256], strides = [1, 1]} : vector<16x288xf32> to vector<16x256xf32>
    %111 = vector.broadcast %109 : vector<16x1xf32> to vector<16x256xf32>
    %112 = arith.mulf %111, %110 : vector<16x256xf32>
    %113 = arith.addf %108, %112 : vector<16x256xf32>
    %114 = vector.extract_strided_slice %7 {offsets = [0, 21], sizes = [16, 1], strides = [1, 1]} : vector<16x33xf32> to vector<16x1xf32>
    %115 = vector.extract_strided_slice %6 {offsets = [0, 21], sizes = [16, 256], strides = [1, 1]} : vector<16x288xf32> to vector<16x256xf32>
    %116 = vector.broadcast %114 : vector<16x1xf32> to vector<16x256xf32>
    %117 = arith.mulf %116, %115 : vector<16x256xf32>
    %118 = arith.addf %113, %117 : vector<16x256xf32>
    %119 = vector.extract_strided_slice %7 {offsets = [0, 22], sizes = [16, 1], strides = [1, 1]} : vector<16x33xf32> to vector<16x1xf32>
    %120 = vector.extract_strided_slice %6 {offsets = [0, 22], sizes = [16, 256], strides = [1, 1]} : vector<16x288xf32> to vector<16x256xf32>
    %121 = vector.broadcast %119 : vector<16x1xf32> to vector<16x256xf32>
    %122 = arith.mulf %121, %120 : vector<16x256xf32>
    %123 = arith.addf %118, %122 : vector<16x256xf32>
    %124 = vector.extract_strided_slice %7 {offsets = [0, 23], sizes = [16, 1], strides = [1, 1]} : vector<16x33xf32> to vector<16x1xf32>
    %125 = vector.extract_strided_slice %6 {offsets = [0, 23], sizes = [16, 256], strides = [1, 1]} : vector<16x288xf32> to vector<16x256xf32>
    %126 = vector.broadcast %124 : vector<16x1xf32> to vector<16x256xf32>
    %127 = arith.mulf %126, %125 : vector<16x256xf32>
    %128 = arith.addf %123, %127 : vector<16x256xf32>
    %129 = vector.extract_strided_slice %7 {offsets = [0, 24], sizes = [16, 1], strides = [1, 1]} : vector<16x33xf32> to vector<16x1xf32>
    %130 = vector.extract_strided_slice %6 {offsets = [0, 24], sizes = [16, 256], strides = [1, 1]} : vector<16x288xf32> to vector<16x256xf32>
    %131 = vector.broadcast %129 : vector<16x1xf32> to vector<16x256xf32>
    %132 = arith.mulf %131, %130 : vector<16x256xf32>
    %133 = arith.addf %128, %132 : vector<16x256xf32>
    %134 = vector.extract_strided_slice %7 {offsets = [0, 25], sizes = [16, 1], strides = [1, 1]} : vector<16x33xf32> to vector<16x1xf32>
    %135 = vector.extract_strided_slice %6 {offsets = [0, 25], sizes = [16, 256], strides = [1, 1]} : vector<16x288xf32> to vector<16x256xf32>
    %136 = vector.broadcast %134 : vector<16x1xf32> to vector<16x256xf32>
    %137 = arith.mulf %136, %135 : vector<16x256xf32>
    %138 = arith.addf %133, %137 : vector<16x256xf32>
    %139 = vector.extract_strided_slice %7 {offsets = [0, 26], sizes = [16, 1], strides = [1, 1]} : vector<16x33xf32> to vector<16x1xf32>
    %140 = vector.extract_strided_slice %6 {offsets = [0, 26], sizes = [16, 256], strides = [1, 1]} : vector<16x288xf32> to vector<16x256xf32>
    %141 = vector.broadcast %139 : vector<16x1xf32> to vector<16x256xf32>
    %142 = arith.mulf %141, %140 : vector<16x256xf32>
    %143 = arith.addf %138, %142 : vector<16x256xf32>
    %144 = vector.extract_strided_slice %7 {offsets = [0, 27], sizes = [16, 1], strides = [1, 1]} : vector<16x33xf32> to vector<16x1xf32>
    %145 = vector.extract_strided_slice %6 {offsets = [0, 27], sizes = [16, 256], strides = [1, 1]} : vector<16x288xf32> to vector<16x256xf32>
    %146 = vector.broadcast %144 : vector<16x1xf32> to vector<16x256xf32>
    %147 = arith.mulf %146, %145 : vector<16x256xf32>
    %148 = arith.addf %143, %147 : vector<16x256xf32>
    %149 = vector.extract_strided_slice %7 {offsets = [0, 28], sizes = [16, 1], strides = [1, 1]} : vector<16x33xf32> to vector<16x1xf32>
    %150 = vector.extract_strided_slice %6 {offsets = [0, 28], sizes = [16, 256], strides = [1, 1]} : vector<16x288xf32> to vector<16x256xf32>
    %151 = vector.broadcast %149 : vector<16x1xf32> to vector<16x256xf32>
    %152 = arith.mulf %151, %150 : vector<16x256xf32>
    %153 = arith.addf %148, %152 : vector<16x256xf32>
    %154 = vector.extract_strided_slice %7 {offsets = [0, 29], sizes = [16, 1], strides = [1, 1]} : vector<16x33xf32> to vector<16x1xf32>
    %155 = vector.extract_strided_slice %6 {offsets = [0, 29], sizes = [16, 256], strides = [1, 1]} : vector<16x288xf32> to vector<16x256xf32>
    %156 = vector.broadcast %154 : vector<16x1xf32> to vector<16x256xf32>
    %157 = arith.mulf %156, %155 : vector<16x256xf32>
    %158 = arith.addf %153, %157 : vector<16x256xf32>
    %159 = vector.extract_strided_slice %7 {offsets = [0, 30], sizes = [16, 1], strides = [1, 1]} : vector<16x33xf32> to vector<16x1xf32>
    %160 = vector.extract_strided_slice %6 {offsets = [0, 30], sizes = [16, 256], strides = [1, 1]} : vector<16x288xf32> to vector<16x256xf32>
    %161 = vector.broadcast %159 : vector<16x1xf32> to vector<16x256xf32>
    %162 = arith.mulf %161, %160 : vector<16x256xf32>
    %163 = arith.addf %158, %162 : vector<16x256xf32>
    %164 = vector.extract_strided_slice %7 {offsets = [0, 31], sizes = [16, 1], strides = [1, 1]} : vector<16x33xf32> to vector<16x1xf32>
    %165 = vector.extract_strided_slice %6 {offsets = [0, 31], sizes = [16, 256], strides = [1, 1]} : vector<16x288xf32> to vector<16x256xf32>
    %166 = vector.broadcast %164 : vector<16x1xf32> to vector<16x256xf32>
    %167 = arith.mulf %166, %165 : vector<16x256xf32>
    %168 = arith.addf %163, %167 : vector<16x256xf32>
    %169 = vector.extract_strided_slice %7 {offsets = [0, 32], sizes = [16, 1], strides = [1, 1]} : vector<16x33xf32> to vector<16x1xf32>
    %170 = vector.extract_strided_slice %6 {offsets = [0, 32], sizes = [16, 256], strides = [1, 1]} : vector<16x288xf32> to vector<16x256xf32>
    %171 = vector.broadcast %169 : vector<16x1xf32> to vector<16x256xf32>
    %172 = arith.mulf %171, %170 : vector<16x256xf32>
    %173 = arith.addf %168, %172 : vector<16x256xf32>
    %174 = vector.shape_cast %173 : vector<16x256xf32> to vector<1x16x256xf32>
    %c0_3 = arith.constant 0 : index
    %c0_4 = arith.constant 0 : index
    %c0_5 = arith.constant 0 : index
    %175 = vector.load %arg4[%c0_3, %c0_4, %c0_5] : memref<1x16x256xf32, #tpu.memory_space<vmem>>, vector<1x16x256xf32>
    tpu.vector_store %arg4[%c0_3, %c0_4, %c0_5], %174 {strides = array<i32>} : memref<1x16x256xf32, #tpu.memory_space<vmem>>, vector<1x16x256xf32>,
    return
  }
  func.func @transform_0(%arg0: i32, %arg1: i32) -> (i32, i32, i32) {
    %c0_i32 = arith.constant 0 : i32
    %c0_i32_0 = arith.constant 0 : i32
    %c0_i32_1 = arith.constant 0 : i32
    return %arg0, %c0_i32, %c0_i32_0 : i32, i32, i32
  }
  func.func @transform_1(%arg0: i32, %arg1: i32) -> (i32, i32) {
    %c0_i32 = arith.constant 0 : i32
    %c0_i32_0 = arith.constant 0 : i32
    %c0_i32_1 = arith.constant 0 : i32
    return %c0_i32, %c0_i32_0 : i32, i32
  }
  func.func @transform_2(%arg0: i32, %arg1: i32) -> (i32, i32, i32) {
    %c0_i32 = arith.constant 0 : i32
    %c0_i32_0 = arith.constant 0 : i32
    return %arg0, %c0_i32, %arg1 : i32, i32, i32
  }
}

</mosaic_0001>

<bundles_post_ra>
// kernel: tpu_custom_call.1
= control target key start
LH: loop header
LB: loop body
LE: loop exit
PB: predicated region body
PF: predicated region fallthrough
CT: control target
= control target key end

     0   :  { %7 = vsyncpa [#allocation3], 0  ;;  %s3062_s0 = inlined_call_operand.hbm [shape: f32[2,1,384], index: 0, kind: input, shape index: {}]   ;;  %s3063_s1 = inlined_call_operand.hbm [shape: f32[16,33], index: 1, kind: input, shape index: {}]   ;;  %s3064_s2 = inlined_call_operand.hbm [shape: f32[2,16,256], index: 2, kind: output, shape index: {}]  }
   0x1   :  { %9 = vsyncpa [#allocation3 + $0x1], 0 }
   0x2   :  { %10 = vsyncpa [#allocation6], 0 }
   0x3   :  { %11 = vsyncpa [#allocation4], 0 }
   0x4   :  { %13 = vsyncpa [#allocation4 + $0x1], 0  ;;  %s2240_s9 = smov 0   ;;  %s2242_s10 = smov 0  }
   0x5   :  { %s2244_s11 = smov 0   ;;  %s2246_s12 = smov 0  }
   0x6   :  { %s2248_s13 = smov 0   ;;  %s2250_s14 = smov 0  }
   0x7 LB: > { %s1782_s15 = sadd.s32 4294967295, %s2153_s14   ;;  %p1784_p0 = scmp.ge.s32.totalorder %s2153_s14, 1  ;;  %s2153_s14 = sphi %s2250_s14, %s19_s14   ;;  %s2149_s13 = sphi %s2248_s13, %s3147_s13   ;;  %s2145_s12 = sphi %s2246_s12, %s3146_s12   ;;  %s2141_s11 = sphi %s2244_s11, %s3145_s11   ;;  %s2137_s10 = sphi %s2242_s10, %s3144_s10   ;;  %s2133_s9 = sphi %s2240_s9, %s3143_s9  }
   0x8   : > { %p2272_p1 = scmp.eq.s32.totalorder %s1782_s15, 0  ;;  %p111_p2 = scmp.lt.s32.totalorder %s2153_s14, 3 }
   0x9   : > { %s122_s19 = sshll.u32 %s3063_s1, 4  ;;  %s2155_s21 = smov [#allocation5]   ;;  %s123_s19 = int_to_ptr.hbm [resolvable:$true] %s122_s19 }
   0xa   : > { %p2280_p3 = pnand %p1784_p0, %p111_p2  ;;  %s124_s22 = sshll.u32 %s2155_s21, 4  ;;  %s125_s22 = int_to_ptr.vmem [resolvable:$true] %s124_s22 }
   0xb   : > { %p1786_p6 = scmp.ge.s32.totalorder %s2153_s14, 2  ;;  %s2156_s23 = smov 128  }
   0xc   : > { %p1807_p4 = pneg %p2280_p3  ;;  %s2157_s24 = smov 8  }
   0xd   : > { %s1783_s25 = sadd.s32 4294967294, %s2153_s14   ;;  %s31_s26 = sadd.s32 1, %s2149_s13 }
   0xe   : > { %p1808_p5 = pnand %p1807_p4, %p2272_p1  ;;  %s38_s27 = sadd.s32 1, %s2141_s11 }
   0xf   : > { %p33_p7 = scmp.ge.s32.totalorder %s31_s26, 2  ;;  %p45_p8 = scmp.ne.s32.totalorder %s2141_s11, %s2137_s10 }
  0x10   : > { %1810 = dma.hbm_to_vmem [thread:$0]  (!%p1808_p5), %s123_s19, 256, %s125_s22, [#allocation6], %s2156_s23, %s2156_s23, %s2157_s24  }
  0x11   : > { %p46_p9 = scmp.eq.s32.totalorder %s2153_s14, 0  ;;  %p51_p10 = scmp.ne.s32.totalorder %s2137_s10, %s2133_s9 }
  0x12   : > { %s3149_s26 = smov (%p33_p7, %s31_s26), 0  ;;  %p98_p13 = scmp.eq.s32.totalorder %s1782_s15, 1 }
  0x13   : > { %p2299_p11 = por %p46_p9, %p45_p8  ;;  %p2305_p12 = por %p2272_p1, %p51_p10 }
  0x14   : > { %s35_s30 = ssub.s32 %s2149_s13, %s3149_s26  ;;  %p104_p2 = scmp.eq.s32.totalorder %s1783_s25, 1 }
  0x15   : > { %p36_p0 = scmp.eq.s32.totalorder %s35_s30, 0  ;;  %p2311_p4 = por %p98_p13, %p45_p8 }
  0x16   : > { %p1820_p5 = scmp.lt.s32.totalorder %s2153_s14, 2  ;;  %p2319_p7 = por %p104_p2, %p51_p10 }
  0x17   : > { %s2317_s4 = scalar_select %p36_p0, %s2141_s11, %s38_s27  }
  0x18   : > { %s138_s6 = sand.u32 1, %s2141_s11   ;;  %s1797_s8 = smul.u32 3, %s2149_s13 }
  0x19   : > { %s1796_s7 = smul.u32 3, %s138_s6  ;;  %p1812_p9 = pnand %p1820_p5, %p2299_p11 }
  0x1a   : > { %s146_s18 = scalar_lea.hbm %s3062_s0, %s1797_s8  ;;  %s139_s23 = scalar_lea.sflag [#allocation3], %s138_s6 }
  0x1b   : > { %s142_s19 = scalar_lea.vmem [#allocation2], %s1796_s7  ;;  %s148_s22 = sshll.u32 %s146_s18, 4  ;;  %s149_s22 = int_to_ptr.hbm [resolvable:$true] %s148_s22 }
  0x1c   : > { %s150_s21 = sshll.u32 %s142_s19, 4  ;;  %159 = sbr.rel (%p2280_p3) target bundleno = 3608 (0xe18), region = 28  ;;  %s151_s21 = int_to_ptr.vmem [resolvable:$true] %s150_s21 }
  0x1d   : > { %1814 = dma.hbm_to_vmem [thread:$0]  (!%p1812_p9), %s149_s22, 48, %s151_s21, %s139_s23  }
  0x21   : > { %s2333_s24 = sand.u32 1, %s2137_s10  }
  0x22   : > { %s1798_s25 = smul.u32 3, %s2333_s24  ;;  %s162_s27 = scalar_lea.sflag [#allocation3], %s2333_s24 }
  0x24   : > { %s2337_s28 = scalar_lea.vmem [#allocation2], %s1798_s25 }
  0x25   : > { %2120 = dma.done.wait (%p2305_p12), %s162_s27, 48  }
  0x26   : > { %2122 = vsyncadd (%p2305_p12), %s162_s27, 4294967248 }
  0x27   : > { %2124 = dma.done.wait (%p2272_p1), [#allocation6], 256  }
  0x28   : > { %2126 = vsyncadd (%p2272_p1), [#allocation6], 4294967040  ;;  %v2158_v0 = vmov 1   ;;  %v2159_v1 = vmov 0   ;;  %v2160_v2 = vmov 2   ;;  %v2347_v3 = vld [vmem:[#allocation5] sm:$0xff] }
  0x29   : > { %1942 = vset.pattern.permute.xlu1 %v2158_v0  ;;  %1941 = vset.pattern.permute.xlu0 %v2159_v1  ;;  %v2349_v4 = vld [vmem:[#allocation5 + $0x8] sm:$0xff]  ;;  %v2161_v5 = vmov 3   ;;  %v2162_v6 = vmov 4   ;;  %v2163_v7 = vmov 5   ;;  %v197_v8 = vld [vmem:[%s2337_s28] sm:$0x7] }
  0x2a   : > { %1944 = vset.pattern.permute.xlu2 %v2160_v2  ;;  %226 = vperm.xlu1 %1942, %v2347_v3   ;;  %v2364_v9 = vperm.slane %v197_v8, 0  ;;  %v2366_v10 = vperm.slane %v197_v8, 2  ;;  %s2164_s16 = smov 127   ;;  %v2370_v14 = vperm.slane %v197_v8, 1  ;;  %s2165_s20 = smov 126   ;;  %v2166_v26 = vmov 6  }
  0x2b   : > { %207 = vperm.xlu0 %1941, %v2347_v3   ;;  %275 = vperm.xlu2 %1944, %v2349_v4   ;;  %s2167_s29 = smov 125   ;;  %s2168_s30 = smov 124   ;;  %vm257_vm0 = vcmask 1039360   ;;  %vm302_vm1 = vcmask 1031168   ;;  %vm347_vm2 = vcmask 1022976   ;;  %vm392_vm3 = vcmask 1014784  }
  0x2c   : > { %3084 = vst [vmem:[#allocation11_spill] sm:$0xff] %v2364_v9  ;;  %s2169_s6 = smov 123   ;;  %s2171_s7 = smov 122   ;;  %vm437_vm4 = vcmask 1006592   ;;  %vm482_vm5 = vcmask 998400   ;;  %vm527_vm6 = vcmask 990208  }
  0x2d   : > { %3085 = vst [vmem:[#allocation12_spill] sm:$0xff] %v2366_v10  ;;  %s2173_s8 = smov 121   ;;  %s2175_s17 = smov 120   ;;  %vm572_vm7 = vcmask 982016   ;;  %vm617_vm8 = vcmask 973824   ;;  %vm3077_vm9 = vcmask 965632  }
  0x2e   : > { %s2177_s15 = smov 119   ;;  %s2179_s18 = smov 118   ;;  %vm707_vm10 = vcmask 957440   ;;  %vm752_vm11 = vcmask 949248   ;;  %vm797_vm12 = vcmask 941056   ;;  %vm842_vm13 = vcmask 932864  }
  0x2f   : > { %s2181_s19 = smov 117   ;;  %s2183_s21 = smov 116   ;;  %vm887_vm14 = vcmask 924672   ;;  %vm932_vm15 = vcmask 916480  }
  0x30   : > { %s2185_s22 = smov 115   ;;  %s2187_s23 = smov 114  }
  0x31   : > { %s2189_s25 = smov 113   ;;  %s2191_s27 = smov 112  }
  0x32   : > { %230 = vperm.xlu1 %1942, %v2349_v4   ;;  %s2193_s28 = smov 111  }
  0x33   : > { %212 = vperm.xlu0 %1941, %v2349_v4  }
  0x3a   : > { %1943 = vset.pattern.permute.xlu1 %v2160_v2 }
  0x3b   : > { %1945 = vset.pattern.permute.xlu0 %v2161_v5  ;;  %271 = vperm.xlu1 %1943, %v2347_v3  }
  0x3c   : > { %316 = vperm.xlu0 %1945, %v2347_v3  }
  0x43   : > { %1946 = vset.pattern.permute.xlu1 %v2161_v5 }
  0x44   : > { %1947 = vset.pattern.permute.xlu0 %v2162_v6  ;;  %320 = vperm.xlu1 %1946, %v2349_v4  }
  0x45   : > { %361 = vperm.xlu0 %1947, %v2347_v3  }
  0x4c   : > { %1948 = vset.pattern.permute.xlu1 %v2162_v6  ;;  %v2170_v6 = vmov 7  }
  0x4d   : > { %1949 = vset.pattern.permute.xlu0 %v2163_v7  ;;  %365 = vperm.xlu1 %1948, %v2349_v4  }
  0x4e   : > { %406 = vperm.xlu0 %1949, %v2347_v3  }
  0x55   : > { %1950 = vset.pattern.permute.xlu1 %v2163_v7 }
  0x56   : > { %410 = vperm.xlu1 %1950, %v2349_v4   ;;  %1951 = vset.pattern.permute.xlu0 %v2166_v26 }
  0x5e   : > { %1952 = vset.pattern.permute.xlu1 %v2166_v26 }
  0x85   : > { %v276_v24 = vpop.permute.xlu2 %275 }
  0x86   : > { %v281_v27 = vmul.f32 %v276_v24, %v2364_v9  ;;  %v282_v28 = vmul.f32 %v276_v24, %v2370_v14  ;;  %v283_v34 = vmul.f32 %v276_v24, %v2366_v10 }
  0x9c   : > { %v227_v11 = vpop.permute.xlu1 %226 }
  0x9d   : > { %v235_v12 = vmul.f32 %v227_v11, %v2366_v10  ;;  %v233_v13 = vmul.f32 %v227_v11, %v2364_v9  ;;  %v234_v18 = vmul.f32 %v227_v11, %v2370_v14  ;;  %v2375_v19 = vpop.permute.xlu0 %207 }
  0x9f   : > { %249 = vrot.lane.b32.xlu0 %v235_v12, %s2164_s16  ;;  %245 = vrot.lane.b32.xlu2 %v233_v13, %s2164_s16 }
  0xa4   : > { %v231_v15 = vpop.permute.xlu1 %230 }
  0xa5   : > { %v238_v16 = vmul.f32 %v231_v15, %v2366_v10  ;;  %v236_v17 = vmul.f32 %v231_v15, %v2364_v9  ;;  %v237_v21 = vmul.f32 %v231_v15, %v2370_v14  ;;  %v2380_v25 = vpop.permute.xlu0 %212 }
  0xa7   : > { %255 = vrot.lane.b32.xlu0 %v238_v16, %s2164_s16  ;;  %251 = vrot.lane.b32.xlu1 %v236_v17, %s2164_s16 }
  0xa8   : > { %247 = vrot.lane.b32.xlu2 %v234_v18, %s2164_s16 }
  0xad   : > { %v272_v20 = vpop.permute.xlu1 %271 }
  0xae   : > { %v278_v22 = vmul.f32 %v272_v20, %v2364_v9  ;;  %v279_v23 = vmul.f32 %v272_v20, %v2370_v14  ;;  %v280_v29 = vmul.f32 %v272_v20, %v2366_v10  ;;  %v317_v31 = vpop.permute.xlu0 %316 }
  0xaf   : > { %v324_v33 = vmul.f32 %v317_v31, %v2370_v14  ;;  %v323_v37 = vmul.f32 %v317_v31, %v2364_v9  ;;  %v325_v43 = vmul.f32 %v317_v31, %v2366_v10 }
  0xb0   : > { %253 = vrot.lane.b32.xlu2 %v237_v21, %s2164_s16  ;;  %290 = vrot.lane.b32.xlu0 %v278_v22, %s2165_s20  ;;  %v2172_v21 = vmov 8   ;;  %s2195_s16 = smov 110  }
  0xb1   : > { %292 = vrot.lane.b32.xlu1 %v279_v23, %s2165_s20 }
  0xb6   : > { %v321_v30 = vpop.permute.xlu1 %320 }
  0xb7   : > { %v326_v32 = vmul.f32 %v321_v30, %v2364_v9  ;;  %v327_v38 = vmul.f32 %v321_v30, %v2370_v14  ;;  %v362_v40 = vpop.permute.xlu0 %361  ;;  %v328_v44 = vmul.f32 %v321_v30, %v2366_v10 }
  0xb8   : > { %294 = vrot.lane.b32.xlu2 %v280_v29, %s2165_s20  ;;  %296 = vrot.lane.b32.xlu0 %v281_v27, %s2165_s20  ;;  %v369_v42 = vmul.f32 %v362_v40, %v2370_v14  ;;  %v368_v48 = vmul.f32 %v362_v40, %v2364_v9  ;;  %v370_v49 = vmul.f32 %v362_v40, %v2366_v10 }
  0xb9   : > { %298 = vrot.lane.b32.xlu1 %v282_v28, %s2165_s20 }
  0xbf   : > { %v366_v35 = vpop.permute.xlu1 %365 }
  0xc0   : > { %300 = vrot.lane.b32.xlu2 %v283_v34, %s2165_s20  ;;  %341 = vrot.lane.b32.xlu0 %v326_v32, %s2167_s29  ;;  %v371_v36 = vmul.f32 %v366_v35, %v2364_v9  ;;  %v372_v45 = vmul.f32 %v366_v35, %v2370_v14  ;;  %v407_v46 = vpop.permute.xlu0 %406  ;;  %v373_v50 = vmul.f32 %v366_v35, %v2366_v10  ;;  %v2174_v35 = vmov 9   ;;  %s2197_s20 = smov 109  }
  0xc1   : > { %337 = vrot.lane.b32.xlu1 %v324_v33, %s2167_s29  ;;  %v414_v47 = vmul.f32 %v407_v46, %v2370_v14  ;;  %v413_v52 = vmul.f32 %v407_v46, %v2364_v9  ;;  %v415_v53 = vmul.f32 %v407_v46, %v2366_v10 }
  0xc8   : > { %335 = vrot.lane.b32.xlu2 %v323_v37, %s2167_s29  ;;  %386 = vrot.lane.b32.xlu0 %v371_v36, %s2168_s30  ;;  %v411_v39 = vpop.permute.xlu1 %410 }
  0xc9   : > { %343 = vrot.lane.b32.xlu1 %v327_v38, %s2167_s29  ;;  %v416_v41 = vmul.f32 %v411_v39, %v2364_v9  ;;  %v417_v51 = vmul.f32 %v411_v39, %v2370_v14  ;;  %v418_v54 = vmul.f32 %v411_v39, %v2366_v10 }
  0xd0   : > { %339 = vrot.lane.b32.xlu2 %v325_v43, %s2167_s29  ;;  %431 = vrot.lane.b32.xlu0 %v416_v41, %s2169_s6 }
  0xd1   : > { %382 = vrot.lane.b32.xlu1 %v369_v42, %s2168_s30 }
  0xd8   : > { %345 = vrot.lane.b32.xlu2 %v328_v44, %s2167_s29  ;;  %451 = vperm.xlu0 %1951, %v2347_v3   ;;  %s2199_s29 = smov 108  }
  0xd9   : > { %388 = vrot.lane.b32.xlu1 %v372_v45, %s2168_s30 }
  0xe0   : > { %380 = vrot.lane.b32.xlu2 %v368_v48, %s2168_s30  ;;  %1953 = vset.pattern.permute.xlu0 %v2170_v6 }
  0xe1   : > { %427 = vrot.lane.b32.xlu1 %v414_v47, %s2169_s6  ;;  %v2176_v47 = vmov 10  }
  0xe8   : > { %384 = vrot.lane.b32.xlu2 %v370_v49, %s2168_s30 }
  0xe9   : > { %455 = vperm.xlu1 %1952, %v2349_v4  }
  0xf0   : > { %390 = vrot.lane.b32.xlu2 %v373_v50, %s2168_s30  ;;  %s2201_s30 = smov 107  }
  0xf1   : > { %433 = vrot.lane.b32.xlu1 %v417_v51, %s2169_s6 }
  0xf2   : > { %1954 = vset.pattern.permute.xlu1 %v2170_v6 }
  0xf8   : > { %425 = vrot.lane.b32.xlu2 %v413_v52, %s2169_s6 }
 0x100   : > { %429 = vrot.lane.b32.xlu2 %v415_v53, %s2169_s6 }
 0x108   : > { %435 = vrot.lane.b32.xlu2 %v418_v54, %s2169_s6  ;;  %s2203_s6 = smov 106  }
 0x111   : > { %v2406_v55 = vpop.permute.xlu0 %249 }
 0x119   : > { %v2408_v56 = vpop.permute.xlu0 %255  ;;  %v2410_v57 = vpop.permute.xlu1 %251 }
 0x122   : > { %v2412_v58 = vpop.permute.xlu0 %290 }
 0x123   : > { %3086 = vst [vmem:[#allocation13_spill] sm:$0xff] %v2412_v58  ;;  %v2414_v59 = vpop.permute.xlu1 %292 }
 0x12a   : > { %v2416_v60 = vpop.permute.xlu0 %296 }
 0x12b   : > { %v2418_v61 = vpop.permute.xlu1 %298 }
 0x132   : > { %v2420_v62 = vpop.permute.xlu0 %341 }
 0x133   : > { %v2422_v63 = vpop.permute.xlu1 %337 }
 0x13a   : > { %v2424_v0 = vpop.permute.xlu0 %386 }
 0x13b   : > { %v2426_v1 = vpop.permute.xlu1 %343 }
 0x142   : > { %v2428_v2 = vpop.permute.xlu0 %431 }
 0x143   : > { %v2430_v5 = vpop.permute.xlu1 %382 }
 0x14a   : > { %v452_v7 = vpop.permute.xlu0 %451 }
 0x14b   : > { %v2432_v8 = vpop.permute.xlu1 %388  ;;  %v459_v11 = vmul.f32 %v452_v7, %v2370_v14  ;;  %v458_v12 = vmul.f32 %v452_v7, %v2364_v9  ;;  %v460_v13 = vmul.f32 %v452_v7, %v2366_v10 }
 0x14d   : > { %472 = vrot.lane.b32.xlu1 %v459_v11, %s2171_s7  ;;  %470 = vrot.lane.b32.xlu2 %v458_v12, %s2171_s7 }
 0x153   : > { %v2437_v15 = vpop.permute.xlu1 %427 }
 0x155   : > { %474 = vrot.lane.b32.xlu2 %v460_v13, %s2171_s7  ;;  %v2178_v13 = vmov 11  }
 0x15b   : > { %v456_v16 = vpop.permute.xlu1 %455 }
 0x15c   : > { %v462_v17 = vmul.f32 %v456_v16, %v2370_v14  ;;  %v461_v18 = vmul.f32 %v456_v16, %v2364_v9  ;;  %v463_v20 = vmul.f32 %v456_v16, %v2366_v10 }
 0x15e   : > { %478 = vrot.lane.b32.xlu1 %v462_v17, %s2171_s7  ;;  %476 = vrot.lane.b32.xlu0 %v461_v18, %s2171_s7 }
 0x15f   : > { %480 = vrot.lane.b32.xlu2 %v463_v20, %s2171_s7  ;;  %s2205_s7 = smov 105  }
 0x163   : > { %v2444_v22 = vpop.permute.xlu1 %433 }
 0x166   : > { %500 = vperm.xlu1 %1954, %v2349_v4   ;;  %496 = vperm.xlu0 %1953, %v2347_v3  }
 0x16e   : > { %1955 = vset.pattern.permute.xlu0 %v2172_v21  ;;  %1956 = vset.pattern.permute.xlu1 %v2172_v21 }
 0x1bf   : > { %v2446_v23 = vpop.permute.xlu1 %472 }
 0x1d0   : > { %v2448_v24 = vpop.permute.xlu0 %476  ;;  %v2450_v26 = vpop.permute.xlu1 %478 }
 0x1d8   : > { %v497_v27 = vpop.permute.xlu0 %496  ;;  %v501_v28 = vpop.permute.xlu1 %500 }
 0x1d9   : > { %v504_v29 = vmul.f32 %v497_v27, %v2370_v14  ;;  %v506_v30 = vmul.f32 %v501_v28, %v2364_v9  ;;  %v503_v31 = vmul.f32 %v497_v27, %v2364_v9  ;;  %v507_v32 = vmul.f32 %v501_v28, %v2370_v14 }
 0x1da   : > { %v505_v33 = vmul.f32 %v497_v27, %v2366_v10  ;;  %v508_v34 = vmul.f32 %v501_v28, %v2366_v10 }
 0x1db   : > { %517 = vrot.lane.b32.xlu1 %v504_v29, %s2173_s8  ;;  %521 = vrot.lane.b32.xlu0 %v506_v30, %s2173_s8 }
 0x1dc   : > { %515 = vrot.lane.b32.xlu2 %v503_v31, %s2173_s8 }
 0x1e3   : > { %523 = vrot.lane.b32.xlu1 %v507_v32, %s2173_s8  ;;  %541 = vperm.xlu0 %1955, %v2347_v3  }
 0x1e4   : > { %519 = vrot.lane.b32.xlu2 %v505_v33, %s2173_s8  ;;  %v2500_v33 = vpop.permute.xlu2 %245 }
 0x1e5   : > { %3087 = vst [vmem:[#allocation14_spill] sm:$0xff] %v2500_v33 }
 0x1eb   : > { %545 = vperm.xlu1 %1956, %v2349_v4   ;;  %1957 = vset.pattern.permute.xlu0 %v2174_v35 }
 0x1ec   : > { %525 = vrot.lane.b32.xlu2 %v508_v34, %s2173_s8  ;;  %v2502_v34 = vpop.permute.xlu2 %247  ;;  %s2207_s8 = smov 104  }
 0x1f3   : > { %1958 = vset.pattern.permute.xlu1 %v2174_v35 }
 0x1f4   : > { %v2504_v35 = vpop.permute.xlu2 %253 }
 0x24d   : > { %v2460_v36 = vpop.permute.xlu0 %521  ;;  %v2462_v37 = vpop.permute.xlu1 %517 }
 0x255   : > { %v542_v38 = vpop.permute.xlu0 %541  ;;  %v2464_v39 = vpop.permute.xlu1 %523 }
 0x256   : > { %v549_v40 = vmul.f32 %v542_v38, %v2370_v14  ;;  %v548_v41 = vmul.f32 %v542_v38, %v2364_v9  ;;  %v550_v45 = vmul.f32 %v542_v38, %v2366_v10  ;;  %v260_v38 = vsel %vm257_vm0, %v2410_v57, %v2504_v35 }
 0x257   : > { %v395_v57 = vsel %vm392_vm3, %v2424_v0, %v2432_v8  ;;  %v530_v0 = vsel %vm527_vm6, %v2460_v36, %v2464_v39 }
 0x258   : > { %562 = vrot.lane.b32.xlu1 %v549_v40, %s2175_s17  ;;  %560 = vrot.lane.b32.xlu2 %v548_v41, %s2175_s17  ;;  %v2180_v40 = vmov 12   ;;  %v217_v41 = vmul.f32 %v2380_v25, %v2364_v9 }
 0x25d   : > { %v546_v42 = vpop.permute.xlu1 %545 }
 0x25e   : > { %v552_v43 = vmul.f32 %v546_v42, %v2370_v14  ;;  %v551_v44 = vmul.f32 %v546_v42, %v2364_v9  ;;  %v553_v46 = vmul.f32 %v546_v42, %v2366_v10  ;;  %v305_v42 = vsel %vm302_vm1, %v2416_v60, %v2418_v61 }
 0x25f   : > { %v485_v60 = vsel %vm482_vm5, %v2448_v24, %v2450_v26 }
 0x260   : > { %568 = vrot.lane.b32.xlu1 %v552_v43, %s2175_s17  ;;  %566 = vrot.lane.b32.xlu0 %v551_v44, %s2175_s17  ;;  %v268_v43 = vadd.f32 %v260_v38, %v217_v41  ;;  %v350_v44 = vsel %vm347_vm2, %v2420_v62, %v2426_v1 }
 0x261   : > { %564 = vrot.lane.b32.xlu2 %v550_v45, %s2175_s17 }
 0x262   : > { %v313_v45 = vadd.f32 %v305_v42, %v268_v43 }
 0x268   : > { %590 = vperm.xlu1 %1958, %v2349_v4   ;;  %586 = vperm.xlu0 %1957, %v2347_v3  }
 0x269   : > { %570 = vrot.lane.b32.xlu2 %v553_v46, %s2175_s17  ;;  %v358_v46 = vadd.f32 %v350_v44, %v313_v45  ;;  %s2209_s17 = smov 103  }
 0x270   : > { %1959 = vset.pattern.permute.xlu0 %v2176_v47  ;;  %1960 = vset.pattern.permute.xlu1 %v2176_v47  ;;  %v440_v47 = vsel %vm437_vm4, %v2428_v2, %v2444_v22 }
 0x2ca   : > { %v2474_v48 = vpop.permute.xlu1 %562 }
 0x2d2   : > { %v2476_v49 = vpop.permute.xlu0 %566  ;;  %v2478_v50 = vpop.permute.xlu1 %568 }
 0x2d3   : > { %v575_v2 = vsel %vm572_vm7, %v2476_v49, %v2478_v50 }
 0x2da   : > { %v587_v51 = vpop.permute.xlu0 %586  ;;  %v591_v52 = vpop.permute.xlu1 %590 }
 0x2db   : > { %v593_v53 = vmul.f32 %v587_v51, %v2364_v9  ;;  %v594_v54 = vmul.f32 %v587_v51, %v2370_v14  ;;  %v596_v6 = vmul.f32 %v591_v52, %v2364_v9  ;;  %v597_v7 = vmul.f32 %v591_v52, %v2370_v14 }
 0x2dc   : > { %v595_v11 = vmul.f32 %v587_v51, %v2366_v10  ;;  %v598_v12 = vmul.f32 %v591_v52, %v2366_v10  ;;  %v403_v51 = vadd.f32 %v395_v57, %v358_v46 }
 0x2dd   : > { %607 = vrot.lane.b32.xlu1 %v594_v54, %s2177_s15  ;;  %611 = vrot.lane.b32.xlu0 %v596_v6, %s2177_s15 }
 0x2de   : > { %605 = vrot.lane.b32.xlu2 %v593_v53, %s2177_s15  ;;  %v448_v52 = vadd.f32 %v440_v47, %v403_v51 }
 0x2e0   : > { %v493_v53 = vadd.f32 %v485_v60, %v448_v52  ;;  %v2184_v52 = vmov 14  }
 0x2e2   : > { %v538_v54 = vadd.f32 %v530_v0, %v493_v53 }
 0x2e4   : > { %v583_v24 = vadd.f32 %v575_v2, %v538_v54 }
 0x2e5   : > { %613 = vrot.lane.b32.xlu1 %v597_v7, %s2177_s15  ;;  %631 = vperm.xlu0 %1959, %v2347_v3  }
 0x2e6   : > { %609 = vrot.lane.b32.xlu2 %v595_v11, %s2177_s15 }
 0x2ed   : > { %635 = vperm.xlu1 %1960, %v2349_v4   ;;  %1961 = vset.pattern.permute.xlu0 %v2178_v13 }
 0x2ee   : > { %615 = vrot.lane.b32.xlu2 %v598_v12, %s2177_s15  ;;  %s2211_s15 = smov 102  }
 0x2f5   : > { %1962 = vset.pattern.permute.xlu1 %v2178_v13 }
 0x34f   : > { %v612_v16 = vpop.permute.xlu0 %611  ;;  %v2488_v17 = vpop.permute.xlu1 %607 }
 0x357   : > { %v632_v18 = vpop.permute.xlu0 %631  ;;  %v2490_v20 = vpop.permute.xlu1 %613 }
 0x358   : > { %v638_v21 = vmul.f32 %v632_v18, %v2364_v9  ;;  %v639_v27 = vmul.f32 %v632_v18, %v2370_v14  ;;  %v640_v31 = vmul.f32 %v632_v18, %v2366_v10  ;;  %v620_v6 = vsel %vm617_vm8, %v612_v16, %v2490_v20 }
 0x359   : > { %v628_v7 = vadd.f32 %v620_v6, %v583_v24 }
 0x35a   : > { %652 = vrot.lane.b32.xlu1 %v639_v27, %s2179_s18  ;;  %650 = vrot.lane.b32.xlu2 %v638_v21, %s2179_s18 }
 0x35f   : > { %v636_v28 = vpop.permute.xlu1 %635 }
 0x360   : > { %v642_v29 = vmul.f32 %v636_v28, %v2370_v14  ;;  %v641_v30 = vmul.f32 %v636_v28, %v2364_v9  ;;  %v643_v32 = vmul.f32 %v636_v28, %v2366_v10 }
 0x362   : > { %658 = vrot.lane.b32.xlu1 %v642_v29, %s2179_s18  ;;  %656 = vrot.lane.b32.xlu0 %v641_v30, %s2179_s18 }
 0x363   : > { %654 = vrot.lane.b32.xlu2 %v640_v31, %s2179_s18  ;;  %v2182_v31 = vmov 13  }
 0x36a   : > { %680 = vperm.xlu1 %1962, %v2349_v4   ;;  %676 = vperm.xlu0 %1961, %v2347_v3  }
 0x36b   : > { %660 = vrot.lane.b32.xlu2 %v643_v32, %s2179_s18  ;;  %s2213_s18 = smov 101  }
 0x372   : > { %1963 = vset.pattern.permute.xlu0 %v2180_v40  ;;  %1964 = vset.pattern.permute.xlu1 %v2180_v40 }
 0x3cc   : > { %v2526_v62 = vpop.permute.xlu1 %652 }
 0x3d4   : > { %v657_v11 = vpop.permute.xlu0 %656  ;;  %v2536_v12 = vpop.permute.xlu1 %658 }
 0x3d5   : > { %3088 = vst [vmem:[#allocation15_spill] sm:$0xff] %v2536_v12  ;;  %v665_v36 = vsel %vm3077_vm9, %v657_v11, %v2536_v12 }
 0x3d6   : > { %v673_v13 = vadd.f32 %v665_v36, %v628_v7 }
 0x3dc   : > { %v677_v18 = vpop.permute.xlu0 %676  ;;  %v681_v21 = vpop.permute.xlu1 %680 }
 0x3dd   : > { %v683_v27 = vmul.f32 %v677_v18, %v2364_v9  ;;  %v684_v49 = vmul.f32 %v677_v18, %v2370_v14  ;;  %v686_v28 = vmul.f32 %v681_v21, %v2364_v9  ;;  %v687_v16 = vmul.f32 %v681_v21, %v2370_v14 }
 0x3de   : > { %v685_v29 = vmul.f32 %v677_v18, %v2366_v10  ;;  %v688_v30 = vmul.f32 %v681_v21, %v2366_v10 }
 0x3df   : > { %697 = vrot.lane.b32.xlu1 %v684_v49, %s2181_s19  ;;  %701 = vrot.lane.b32.xlu0 %v686_v28, %s2181_s19  ;;  %v2186_v49 = vmov 15  }
 0x3e0   : > { %695 = vrot.lane.b32.xlu2 %v683_v27, %s2181_s19 }
 0x3e7   : > { %703 = vrot.lane.b32.xlu1 %v687_v16, %s2181_s19  ;;  %721 = vperm.xlu0 %1963, %v2347_v3  }
 0x3e8   : > { %699 = vrot.lane.b32.xlu2 %v685_v29, %s2181_s19 }
 0x3ef   : > { %725 = vperm.xlu1 %1964, %v2349_v4   ;;  %1965 = vset.pattern.permute.xlu0 %v2182_v31 }
 0x3f0   : > { %705 = vrot.lane.b32.xlu2 %v688_v30, %s2181_s19  ;;  %s2215_s19 = smov 100  }
 0x3f7   : > { %1966 = vset.pattern.permute.xlu1 %v2182_v31 }
 0x451   : > { %v702_v32 = vpop.permute.xlu0 %701  ;;  %v2548_v38 = vpop.permute.xlu1 %697 }
 0x459   : > { %v722_v40 = vpop.permute.xlu0 %721  ;;  %v2550_v41 = vpop.permute.xlu1 %703 }
 0x45a   : > { %3089 = vst [vmem:[#allocation16_spill] sm:$0xff] %v2550_v41  ;;  %v728_v42 = vmul.f32 %v722_v40, %v2364_v9  ;;  %v729_v43 = vmul.f32 %v722_v40, %v2370_v14  ;;  %v710_v44 = vsel %vm707_vm10, %v702_v32, %v2550_v41  ;;  %v730_v51 = vmul.f32 %v722_v40, %v2366_v10 }
 0x45b   : > { %v718_v45 = vadd.f32 %v710_v44, %v673_v13 }
 0x45c   : > { %742 = vrot.lane.b32.xlu1 %v729_v43, %s2183_s21  ;;  %740 = vrot.lane.b32.xlu2 %v728_v42, %s2183_s21 }
 0x461   : > { %v726_v57 = vpop.permute.xlu1 %725 }
 0x462   : > { %v732_v46 = vmul.f32 %v726_v57, %v2370_v14  ;;  %v731_v47 = vmul.f32 %v726_v57, %v2364_v9  ;;  %v733_v60 = vmul.f32 %v726_v57, %v2366_v10 }
 0x464   : > { %748 = vrot.lane.b32.xlu1 %v732_v46, %s2183_s21  ;;  %746 = vrot.lane.b32.xlu0 %v731_v47, %s2183_s21  ;;  %v2590_v47 = vpop.permute.xlu2 %294 }
 0x465   : > { %744 = vrot.lane.b32.xlu2 %v730_v51, %s2183_s21 }
 0x46c   : > { %770 = vperm.xlu1 %1966, %v2349_v4   ;;  %766 = vperm.xlu0 %1965, %v2347_v3   ;;  %v2592_v51 = vpop.permute.xlu2 %300 }
 0x46d   : > { %750 = vrot.lane.b32.xlu2 %v733_v60, %s2183_s21  ;;  %s2218_s21 = smov 99  }
 0x474   : > { %1967 = vset.pattern.permute.xlu0 %v2184_v52  ;;  %1968 = vset.pattern.permute.xlu1 %v2184_v52  ;;  %v2594_v60 = vpop.permute.xlu2 %335  ;;  %v2188_v52 = vmov 16  }
 0x475   : > { %3092 = vst [vmem:[#allocation19_spill] sm:$0xff] %v2594_v60 }
 0x4ce   : > { %v2562_v0 = vpop.permute.xlu1 %742 }
 0x4d6   : > { %v747_v53 = vpop.permute.xlu0 %746  ;;  %v2564_v2 = vpop.permute.xlu1 %748 }
 0x4d7   : > { %3090 = vst [vmem:[#allocation17_spill] sm:$0xff] %v2564_v2  ;;  %v755_v54 = vsel %vm752_vm11, %v747_v53, %v2564_v2  ;;  %v2596_v53 = vpop.permute.xlu2 %339 }
 0x4d8   : > { %v763_v6 = vadd.f32 %v755_v54, %v718_v45 }
 0x4de   : > { %v767_v24 = vpop.permute.xlu0 %766  ;;  %v771_v7 = vpop.permute.xlu1 %770 }
 0x4df   : > { %v773_v11 = vmul.f32 %v767_v24, %v2364_v9  ;;  %v774_v36 = vmul.f32 %v767_v24, %v2370_v14  ;;  %v776_v13 = vmul.f32 %v771_v7, %v2364_v9  ;;  %v777_v18 = vmul.f32 %v771_v7, %v2370_v14 }
 0x4e0   : > { %v775_v21 = vmul.f32 %v767_v24, %v2366_v10  ;;  %v778_v27 = vmul.f32 %v771_v7, %v2366_v10 }
 0x4e1   : > { %787 = vrot.lane.b32.xlu1 %v774_v36, %s2185_s22  ;;  %791 = vrot.lane.b32.xlu0 %v776_v13, %s2185_s22 }
 0x4e2   : > { %785 = vrot.lane.b32.xlu2 %v773_v11, %s2185_s22 }
 0x4e9   : > { %793 = vrot.lane.b32.xlu1 %v777_v18, %s2185_s22  ;;  %811 = vperm.xlu0 %1967, %v2347_v3  }
 0x4ea   : > { %789 = vrot.lane.b32.xlu2 %v775_v21, %s2185_s22 }
 0x4f1   : > { %815 = vperm.xlu1 %1968, %v2349_v4   ;;  %1969 = vset.pattern.permute.xlu0 %v2186_v49 }
 0x4f2   : > { %795 = vrot.lane.b32.xlu2 %v778_v27, %s2185_s22  ;;  %s2220_s22 = smov 98  }
 0x4f9   : > { %1970 = vset.pattern.permute.xlu1 %v2186_v49 }
 0x553   : > { %v792_v28 = vpop.permute.xlu0 %791  ;;  %v2576_v16 = vpop.permute.xlu1 %787 }
 0x55b   : > { %v812_v29 = vpop.permute.xlu0 %811  ;;  %v2578_v30 = vpop.permute.xlu1 %793 }
 0x55c   : > { %3091 = vst [vmem:[#allocation18_spill] sm:$0xff] %v2578_v30  ;;  %v818_v31 = vmul.f32 %v812_v29, %v2364_v9  ;;  %v819_v32 = vmul.f32 %v812_v29, %v2370_v14  ;;  %v800_v40 = vsel %vm797_vm12, %v792_v28, %v2578_v30  ;;  %v820_v57 = vmul.f32 %v812_v29, %v2366_v10 }
 0x55d   : > { %v808_v42 = vadd.f32 %v800_v40, %v763_v6  ;;  %v2600_v6 = vpop.permute.xlu2 %345 }
 0x55e   : > { %832 = vrot.lane.b32.xlu1 %v819_v32, %s2187_s23  ;;  %830 = vrot.lane.b32.xlu2 %v818_v31, %s2187_s23 }
 0x563   : > { %v816_v43 = vpop.permute.xlu1 %815 }
 0x564   : > { %v822_v44 = vmul.f32 %v816_v43, %v2370_v14  ;;  %v821_v45 = vmul.f32 %v816_v43, %v2364_v9  ;;  %v823_v46 = vmul.f32 %v816_v43, %v2366_v10 }
 0x565   : > { %v2606_v13 = vpop.permute.xlu2 %380 }
 0x566   : > { %838 = vrot.lane.b32.xlu1 %v822_v44, %s2187_s23  ;;  %836 = vrot.lane.b32.xlu0 %v821_v45, %s2187_s23  ;;  %3094 = vst [vmem:[#allocation21_spill] sm:$0xff] %v2606_v13 }
 0x567   : > { %834 = vrot.lane.b32.xlu2 %v820_v57, %s2187_s23 }
 0x56d   : > { %v2611_v29 = vpop.permute.xlu2 %384 }
 0x56e   : > { %860 = vperm.xlu1 %1970, %v2349_v4   ;;  %856 = vperm.xlu0 %1969, %v2347_v3  }
 0x56f   : > { %840 = vrot.lane.b32.xlu2 %v823_v46, %s2187_s23  ;;  %s2221_s23 = smov 97  }
 0x575   : > { %v2616_v40 = vpop.permute.xlu2 %390 }
 0x576   : > { %1971 = vset.pattern.permute.xlu0 %v2188_v52  ;;  %1972 = vset.pattern.permute.xlu1 %v2188_v52 }
 0x57d   : > { %v2620_v43 = vpop.permute.xlu2 %425 }
 0x57e   : > { %3095 = vst [vmem:[#allocation22_spill] sm:$0xff] %v2620_v43 }
 0x585   : > { %v2622_v44 = vpop.permute.xlu2 %429 }
 0x58d   : > { %v2624_v45 = vpop.permute.xlu2 %435 }
 0x595   : > { %v2626_v57 = vpop.permute.xlu2 %470 }
 0x596   : > { %3096 = vst [vmem:[#allocation23_spill] sm:$0xff] %v2626_v57 }
 0x59d   : > { %v2628_v46 = vpop.permute.xlu2 %474 }
 0x5a5   : > { %v2630_v52 = vpop.permute.xlu2 %480 }
 0x5d0   : > { %v2598_v54 = vpop.permute.xlu1 %832 }
 0x5d8   : > { %v837_v24 = vpop.permute.xlu0 %836  ;;  %v2602_v7 = vpop.permute.xlu1 %838 }
 0x5d9   : > { %3093 = vst [vmem:[#allocation20_spill] sm:$0xff] %v2602_v7  ;;  %v845_v11 = vsel %vm842_vm13, %v837_v24, %v2602_v7  ;;  %v2632_v24 = vpop.permute.xlu2 %515 }
 0x5da   : > { %v853_v36 = vadd.f32 %v845_v11, %v808_v42  ;;  %3097 = vst [vmem:[#allocation24_spill] sm:$0xff] %v2632_v24 }
 0x5e0   : > { %v857_v18 = vpop.permute.xlu0 %856  ;;  %v861_v21 = vpop.permute.xlu1 %860 }
 0x5e1   : > { %v863_v27 = vmul.f32 %v857_v18, %v2364_v9  ;;  %v864_v49 = vmul.f32 %v857_v18, %v2370_v14  ;;  %v866_v28 = vmul.f32 %v861_v21, %v2364_v9  ;;  %v867_v31 = vmul.f32 %v861_v21, %v2370_v14  ;;  %v2634_v11 = vpop.permute.xlu2 %519 }
 0x5e2   : > { %v865_v32 = vmul.f32 %v857_v18, %v2366_v10  ;;  %v868_v42 = vmul.f32 %v861_v21, %v2366_v10  ;;  %v2190_v21 = vmov 17  }
 0x5e3   : > { %877 = vrot.lane.b32.xlu1 %v864_v49, %s2189_s25  ;;  %881 = vrot.lane.b32.xlu0 %v866_v28, %s2189_s25 }
 0x5e4   : > { %875 = vrot.lane.b32.xlu2 %v863_v27, %s2189_s25 }
 0x5e9   : > { %v2636_v18 = vpop.permute.xlu2 %525 }
 0x5eb   : > { %883 = vrot.lane.b32.xlu1 %v867_v31, %s2189_s25  ;;  %901 = vperm.xlu0 %1971, %v2347_v3  }
 0x5ec   : > { %879 = vrot.lane.b32.xlu2 %v865_v32, %s2189_s25 }
 0x5f1   : > { %v2638_v27 = vpop.permute.xlu2 %560 }
 0x5f2   : > { %3098 = vst [vmem:[#allocation25_spill] sm:$0xff] %v2638_v27 }
 0x5f3   : > { %905 = vperm.xlu1 %1972, %v2349_v4   ;;  %1973 = vset.pattern.permute.xlu0 %v2190_v21 }
 0x5f4   : > { %885 = vrot.lane.b32.xlu2 %v868_v42, %s2189_s25  ;;  %s2222_s25 = smov 96  }
 0x5f9   : > { %v2642_v31 = vpop.permute.xlu2 %564 }
 0x5fb   : > { %1974 = vset.pattern.permute.xlu1 %v2190_v21 }
 0x601   : > { %v2650_v21 = vpop.permute.xlu2 %570 }
 0x609   : > { %v2655_v7 = vpop.permute.xlu2 %605 }
 0x60a   : > { %3101 = vst [vmem:[#allocation28_spill] sm:$0xff] %v2655_v7  ;;  %v2192_v7 = vmov 18  }
 0x655   : > { %v882_v49 = vpop.permute.xlu0 %881  ;;  %v2640_v28 = vpop.permute.xlu1 %877 }
 0x656   : > { %3099 = vst [vmem:[#allocation26_spill] sm:$0xff] %v2640_v28 }
 0x65d   : > { %v902_v32 = vpop.permute.xlu0 %901  ;;  %v2644_v42 = vpop.permute.xlu1 %883 }
 0x65e   : > { %3100 = vst [vmem:[#allocation27_spill] sm:$0xff] %v2644_v42  ;;  %v908_v24 = vmul.f32 %v902_v32, %v2364_v9  ;;  %v909_v57 = vmul.f32 %v902_v32, %v2370_v14  ;;  %v890_v43 = vsel %vm887_vm14, %v882_v49, %v2644_v42  ;;  %v910_v33 = vmul.f32 %v902_v32, %v2366_v10 }
 0x65f   : > { %v898_v13 = vadd.f32 %v890_v43, %v853_v36  ;;  %v2660_v36 = vpop.permute.xlu2 %609 }
 0x660   : > { %922 = vrot.lane.b32.xlu1 %v909_v57, %s2191_s27  ;;  %920 = vrot.lane.b32.xlu2 %v908_v24, %s2191_s27 }
 0x665   : > { %v906_v27 = vpop.permute.xlu1 %905 }
 0x666   : > { %v912_v60 = vmul.f32 %v906_v27, %v2370_v14  ;;  %v911_v58 = vmul.f32 %v906_v27, %v2364_v9  ;;  %v913_v49 = vmul.f32 %v906_v27, %v2366_v10 }
 0x667   : > { %v2662_v43 = vpop.permute.xlu2 %615 }
 0x668   : > { %928 = vrot.lane.b32.xlu1 %v912_v60, %s2191_s27  ;;  %926 = vrot.lane.b32.xlu0 %v911_v58, %s2191_s27 }
 0x669   : > { %924 = vrot.lane.b32.xlu2 %v910_v33, %s2191_s27 }
 0x66f   : > { %v2664_v57 = vpop.permute.xlu2 %650 }
 0x670   : > { %950 = vperm.xlu1 %1974, %v2349_v4   ;;  %946 = vperm.xlu0 %1973, %v2347_v3   ;;  %3102 = vst [vmem:[#allocation29_spill] sm:$0xff] %v2664_v57 }
 0x671   : > { %930 = vrot.lane.b32.xlu2 %v913_v49, %s2191_s27  ;;  %s1789_s27 = sshll.u32 %s2333_s24, 5 }
 0x677   : > { %v2666_v24 = vpop.permute.xlu2 %654 }
 0x678   : > { %1975 = vset.pattern.permute.xlu0 %v2192_v7  ;;  %1976 = vset.pattern.permute.xlu1 %v2192_v7 }
 0x67f   : > { %v2668_v60 = vpop.permute.xlu2 %660 }
 0x687   : > { %v2670_v58 = vpop.permute.xlu2 %695 }
 0x688   : > { %3103 = vst [vmem:[#allocation30_spill] sm:$0xff] %v2670_v58 }
 0x68f   : > { %v2672_v33 = vpop.permute.xlu2 %699 }
 0x697   : > { %v2674_v27 = vpop.permute.xlu2 %705 }
 0x698   : > { %3104 = vst [vmem:[#allocation31_spill] sm:$0xff] %v2674_v27 }
 0x69f   : > { %v2676_v32 = vpop.permute.xlu2 %740 }
 0x6a0   : > { %3105 = vst [vmem:[#allocation32_spill] sm:$0xff] %v2676_v32 }
 0x6a7   : > { %v2678_v49 = vpop.permute.xlu2 %744 }
 0x6af   : > { %v2682_v57 = vpop.permute.xlu2 %750 }
 0x6b0   : > { %3107 = vst [vmem:[#allocation34_spill] sm:$0xff] %v2682_v57 }
 0x6b7   : > { %v2688_v41 = vpop.permute.xlu2 %785 }
 0x6b8   : > { %3108 = vst [vmem:[#allocation35_spill] sm:$0xff] %v2688_v41 }
 0x6bf   : > { %v2695_v57 = vpop.permute.xlu2 %789 }
 0x6d2   : > { %v2680_v42 = vpop.permute.xlu1 %922 }
 0x6d3   : > { %3106 = vst [vmem:[#allocation33_spill] sm:$0xff] %v2680_v42 }
 0x6da   : > { %v927_v30 = vpop.permute.xlu0 %926  ;;  %v2684_v2 = vpop.permute.xlu1 %928 }
 0x6db   : > { %v935_v58 = vsel %vm932_vm15, %v927_v30, %v2684_v2 }
 0x6dc   : > { %v2690_v27 = vadd.f32 %v935_v58, %v898_v13  ;;  %v2700_v13 = vpop.permute.xlu2 %795 }
 0x6de   : > { %3109 = vst [vmem:[#allocation36_spill] sm:$0xff] %v2690_v27 }
 0x6e2   : > { %v947_v32 = vpop.permute.xlu0 %946  ;;  %v951_v28 = vpop.permute.xlu1 %950 }
 0x6e3   : > { %v953_v7 = vmul.f32 %v947_v32, %v2364_v9  ;;  %v954_v12 = vmul.f32 %v947_v32, %v2370_v14  ;;  %v956_v42 = vmul.f32 %v951_v28, %v2364_v9  ;;  %v957_v30 = vmul.f32 %v951_v28, %v2370_v14 }
 0x6e4   : > { %v955_v41 = vmul.f32 %v947_v32, %v2366_v10  ;;  %v958_v58 = vmul.f32 %v951_v28, %v2366_v10 }
 0x6e5   : > { %967 = vrot.lane.b32.xlu1 %v954_v12, %s2193_s28  ;;  %971 = vrot.lane.b32.xlu0 %v956_v42, %s2193_s28  ;;  %v2704_v12 = vpop.permute.xlu2 %830 }
 0x6e6   : > { %965 = vrot.lane.b32.xlu2 %v953_v7, %s2193_s28  ;;  %3110 = vst [vmem:[#allocation37_spill] sm:$0xff] %v2704_v12 }
 0x6ed   : > { %973 = vrot.lane.b32.xlu1 %v957_v30, %s2193_s28  ;;  %991 = vperm.xlu0 %1975, %v2347_v3   ;;  %v835_v42 = vpop.permute.xlu2 %834  ;;  %v259_v3 = vsel %vm257_vm0, %v2502_v34, %v2406_v55  ;;  %v439_v55 = vsel %vm437_vm4, %v2437_v15, %v2622_v44  ;;  %v529_v44 = vsel %vm527_vm6, %v2462_v37, %v2634_v11 }
 0x6ee   : > { %969 = vrot.lane.b32.xlu2 %v955_v41, %s2193_s28  ;;  %v304_v41 = vsel %vm302_vm1, %v2414_v59, %v2590_v47  ;;  %v261_v47 = vsel %vm257_vm0, %v2504_v35, %v2408_v56  ;;  %v574_v35 = vsel %vm572_vm7, %v2474_v48, %v2642_v31  ;;  %v619_v11 = vsel %vm617_vm8, %v2488_v17, %v2660_v36 }
 0x6ef   : > { %v664_v31 = vsel %vm3077_vm9, %v2526_v62, %v2666_v24  ;;  %v709_v36 = vsel %vm707_vm10, %v2548_v38, %v2672_v33  ;;  %v754_v24 = vsel %vm752_vm11, %v2562_v0, %v2678_v49 }
 0x6f5   : > { %995 = vperm.xlu1 %1976, %v2349_v4   ;;  %v2706_v27 = vpop.permute.xlu2 %840  ;;  %v216_v4 = vmul.f32 %v2375_v19, %v2370_v14 }
 0x6f6   : > { %975 = vrot.lane.b32.xlu2 %v958_v58, %s2193_s28  ;;  %v349_v58 = vsel %vm347_vm2, %v2422_v63, %v2596_v53  ;;  %v484_v53 = vsel %vm482_vm5, %v2446_v23, %v2628_v46  ;;  %s191_s28 = scalar_lea.vmem [#allocation7], %s1789_s27 }
 0x6f7   : > { %v267_v28 = vadd.f32 %v259_v3, %v216_v4  ;;  %v218_v4 = vmul.f32 %v2380_v25, %v2370_v14 }
 0x6f9   : > { %v312_v12 = vadd.f32 %v304_v41, %v267_v28  ;;  %v269_v41 = vadd.f32 %v261_v47, %v218_v4 }
 0x6fb   : > { %v357_v10 = vadd.f32 %v349_v58, %v312_v12 }
 0x6fd   : > { %v2708_v7 = vpop.permute.xlu2 %875 }
 0x6fe   : > { %3111 = vst [vmem:[#allocation38_spill] sm:$0xff] %v2708_v7 }
 0x705   : > { %v880_v9 = vpop.permute.xlu2 %879 }
 0x70d   : > { %v2710_v32 = vpop.permute.xlu2 %885 }
 0x715   : > { %v2712_v30 = vpop.permute.xlu2 %920 }
 0x716   : > { %3112 = vst [vmem:[#allocation39_spill] sm:$0xff] %v2712_v30  ;;  %v394_v30 = vsel %vm392_vm3, %v2430_v5, %v2611_v29  ;;  %v306_v29 = vsel %vm302_vm1, %v2418_v61, %v2592_v51  ;;  %v396_v61 = vsel %vm392_vm3, %v2432_v8, %v2616_v40  ;;  %v486_v8 = vsel %vm482_vm5, %v2450_v26, %v2630_v52 }
 0x717   : > { %v402_v3 = vadd.f32 %v394_v30, %v357_v10  ;;  %v351_v10 = vsel %vm347_vm2, %v2426_v1, %v2600_v6  ;;  %v314_v25 = vadd.f32 %v306_v29, %v269_v41  ;;  %v441_v1 = vsel %vm437_vm4, %v2444_v22, %v2624_v45  ;;  %v3113_v29 = vld [vmem:[#allocation15_spill] sm:$0xff]  ;;  %v3114_v41 = vld [vmem:[#allocation26_spill] sm:$0xff] }
 0x718   : > { %v531_v22 = vsel %vm527_vm6, %v2464_v39, %v2636_v18  ;;  %v576_v26 = vsel %vm572_vm7, %v2478_v50, %v2650_v21  ;;  %v799_v39 = vsel %vm797_vm12, %v2576_v16, %v2695_v57  ;;  %v621_v18 = vsel %vm617_vm8, %v2490_v20, %v2662_v43  ;;  %v3116_v57 = vld [vmem:[#allocation16_spill] sm:$0xff]  ;;  %v3117_v43 = vld [vmem:[#allocation33_spill] sm:$0xff] }
 0x719   : > { %v447_v12 = vadd.f32 %v439_v55, %v402_v3  ;;  %v359_v30 = vadd.f32 %v351_v10, %v314_v25  ;;  %v2194_v3 = vmov 19   ;;  %v3115_v10 = vld [vmem:[#allocation31_spill] sm:$0xff] }
 0x71a   : > { %1978 = vset.pattern.permute.xlu1 %v2194_v3  ;;  %1977 = vset.pattern.permute.xlu0 %v2194_v3 }
 0x71b   : > { %v492_v56 = vadd.f32 %v484_v53, %v447_v12  ;;  %v404_v28 = vadd.f32 %v396_v61, %v359_v30  ;;  %v844_v53 = vsel %vm842_vm13, %v2598_v54, %v835_v42  ;;  %v666_v12 = vsel %vm3077_vm9, %v3113_v29, %v2668_v60  ;;  %v3118_v61 = vld [vmem:[#allocation34_spill] sm:$0xff]  ;;  %v3119_v42 = vld [vmem:[#allocation17_spill] sm:$0xff]  ;;  %v3124_v29 = vld [vmem:[#allocation36_spill] sm:$0xff] }
 0x71c   : > { %vm977_vm9 = vcmask 908288  }
 0x71d   : > { %v925_v7 = vpop.permute.xlu2 %924  ;;  %v537_v51 = vadd.f32 %v529_v44, %v492_v56  ;;  %v449_v58 = vadd.f32 %v441_v1, %v404_v28  ;;  %v889_v44 = vsel %vm887_vm14, %v3114_v41, %v880_v9  ;;  %v711_v56 = vsel %vm707_vm10, %v3116_v57, %v3115_v10  ;;  %v3120_v1 = vld [vmem:[#allocation18_spill] sm:$0xff] }
 0x71e   : > { %v801_v9 = vsel %vm797_vm12, %v3120_v1, %v2700_v13  ;;  %v2829_v57 = vld [vmem:[#allocation5 + $0x8] sm:$0xff]  ;;  %v3129_v1 = vld [vmem:[#allocation21_spill] sm:$0xff] }
 0x71f   : > { %v582_v6 = vadd.f32 %v574_v35, %v537_v51  ;;  %v494_v55 = vadd.f32 %v486_v8, %v449_v58  ;;  %v934_v35 = vsel %vm932_vm15, %v3117_v43, %v925_v7  ;;  %v756_v51 = vsel %vm752_vm11, %v3119_v42, %v3118_v61  ;;  %v3121_v58 = vld [vmem:[#allocation20_spill] sm:$0xff]  ;;  %v3127_v61 = vld [vmem:[#allocation13_spill] sm:$0xff] }
 0x720   : > { %v303_v42 = vsel %vm302_vm1, %v3127_v61, %v2414_v59  ;;  %vm1022_vm1 = vcmask 900096  }
 0x721   : > { %v627_v40 = vadd.f32 %v619_v11, %v582_v6  ;;  %v539_v33 = vadd.f32 %v531_v22, %v494_v55  ;;  %v3122_v55 = vld [vmem:[#allocation27_spill] sm:$0xff] }
 0x722   : > { %v891_v13 = vsel %vm887_vm14, %v3122_v55, %v2710_v32  ;;  %v3134_v55 = vld [vmem:[#allocation28_spill] sm:$0xff] }
 0x723   : > { %v672_v45 = vadd.f32 %v664_v31, %v627_v40  ;;  %v584_v49 = vadd.f32 %v576_v26, %v539_v33 }
 0x725   : > { %v931_v46 = vpop.permute.xlu2 %930  ;;  %v717_v52 = vadd.f32 %v709_v36, %v672_v45  ;;  %v629_v21 = vadd.f32 %v621_v18, %v584_v49  ;;  %v846_v36 = vsel %vm842_vm13, %v3121_v58, %v2706_v27  ;;  %v3123_v18 = vld [vmem:[#allocation11_spill] sm:$0xff] }
 0x726   : > { %v936_v3 = vsel %vm932_vm15, %v2684_v2, %v931_v46 }
 0x727   : > { %v762_v4 = vadd.f32 %v754_v24, %v717_v52  ;;  %v674_v20 = vadd.f32 %v666_v12, %v629_v21  ;;  %v3125_v21 = vld [vmem:[#allocation12_spill] sm:$0xff] }
 0x729   : > { %v807_v50 = vadd.f32 %v799_v39, %v762_v4  ;;  %v719_v60 = vadd.f32 %v711_v56, %v674_v20  ;;  %v2832_v56 = vld [vmem:[#allocation5] sm:$0xff] }
 0x72b   : > { %v852_v25 = vadd.f32 %v844_v53, %v807_v50  ;;  %v764_v8 = vadd.f32 %v756_v51, %v719_v60 }
 0x72d   : > { %v897_v30 = vadd.f32 %v889_v44, %v852_v25  ;;  %v809_v45 = vadd.f32 %v801_v9, %v764_v8  ;;  %v3126_v25 = vld [vmem:[#allocation14_spill] sm:$0xff]  ;;  %v393_v9 = vsel %vm392_vm3, %v3129_v1, %v2430_v5  ;;  %vm1112_vm3 = vcmask 883712  }
 0x72e   : > { %v258_v20 = vsel %vm257_vm0, %v3126_v25, %v2502_v34  ;;  %v3130_v34 = vld [vmem:[#allocation22_spill] sm:$0xff]  ;;  %vm3136_vm0 = vcmask 965632  }
 0x72f   : > { %v942_v6 = vadd.f32 %v934_v35, %v897_v30  ;;  %v854_v24 = vadd.f32 %v846_v36, %v809_v45  ;;  %v215_v35 = vmul.f32 %v2375_v19, %v3123_v18  ;;  %v3128_v30 = vld [vmem:[#allocation19_spill] sm:$0xff]  ;;  %v3133_v36 = vld [vmem:[#allocation25_spill] sm:$0xff] }
 0x730   : > { %v348_v60 = vsel %vm347_vm2, %v3128_v30, %v2422_v63  ;;  %v573_v5 = vsel %vm572_vm7, %v3133_v36, %v2474_v48  ;;  %vm1067_vm2 = vcmask 891904   ;;  %vm1292_vm7 = vcmask 850944  }
 0x731   : > { %v899_v26 = vadd.f32 %v891_v13, %v854_v24  ;;  %v266_v51 = vadd.f32 %v258_v20, %v215_v35  ;;  %v3135_v24 = vld [vmem:[#allocation29_spill] sm:$0xff] }
 0x733   : > { %v944_v33 = vadd.f32 %v936_v3, %v899_v26  ;;  %v3137_v26 = vld [vmem:[#allocation30_spill] sm:$0xff] }
 0x740   : > { %v966_v47 = vpop.permute.xlu2 %965 }
 0x748   : > { %v970_v11 = vpop.permute.xlu2 %969 }
 0x750   : > { %v976_v39 = vpop.permute.xlu2 %975 }
 0x757   : > { %v972_v28 = vpop.permute.xlu0 %971  ;;  %v968_v31 = vpop.permute.xlu1 %967 }
 0x758   : > { %v2803_v40 = vsel %vm977_vm9, %v966_v47, %v968_v31  ;;  %v979_v7 = vsel %vm977_vm9, %v968_v31, %v970_v11  ;;  %v311_v11 = vadd.f32 %v303_v42, %v266_v51  ;;  %v3131_v31 = vld [vmem:[#allocation23_spill] sm:$0xff] }
 0x759   : > { %v2809_v22 = vadd.f32 %v979_v7, %v942_v6  ;;  %v483_v59 = vsel %vm482_vm5, %v3131_v31, %v2446_v23  ;;  %v3132_v7 = vld [vmem:[#allocation24_spill] sm:$0xff]  ;;  %v663_v23 = vsel %vm3136_vm0, %v3135_v24, %v2526_v62  ;;  %v2198_v31 = vmov 21  }
 0x75a   : > { %v356_v6 = vadd.f32 %v348_v60, %v311_v11  ;;  %v528_v63 = vsel %vm527_vm6, %v3132_v7, %v2462_v37  ;;  %v708_v37 = vsel %vm707_vm10, %v3137_v26, %v2548_v38  ;;  %vm1202_vm5 = vcmask 867328  }
 0x75b   : > { %vm1247_vm6 = vcmask 859136   ;;  %vm1427_vm10 = vcmask 826368  }
 0x75c   : > { %v401_v19 = vadd.f32 %v393_v9, %v356_v6 }
 0x75f   : > { %v992_v47 = vpop.permute.xlu0 %991  ;;  %v974_v52 = vpop.permute.xlu1 %973 }
 0x760   : > { %v998_v4 = vmul.f32 %v992_v47, %v3123_v18  ;;  %v999_v27 = vmul.f32 %v992_v47, %v2370_v14  ;;  %v980_v49 = vsel %vm977_vm9, %v972_v28, %v974_v52  ;;  %v981_v53 = vsel %vm977_vm9, %v974_v52, %v976_v39  ;;  %v3138_v52 = vld [vmem:[#allocation32_spill] sm:$0xff] }
 0x761   : > { %v2821_v12 = vadd.f32 %v980_v49, %v3124_v29  ;;  %v2823_v32 = vadd.f32 %v981_v53, %v944_v33  ;;  %v1000_v44 = vmul.f32 %v992_v47, %v3125_v21  ;;  %v438_v28 = vsel %vm437_vm4, %v3130_v34, %v2437_v15  ;;  %v3140_v49 = vld [vmem:[#allocation37_spill] sm:$0xff]  ;;  %v3141_v29 = vld [vmem:[#allocation38_spill] sm:$0xff] }
 0x762   : > { %1012 = vrot.lane.b32.xlu1 %v999_v27, %s2195_s16  ;;  %1010 = vrot.lane.b32.xlu2 %v998_v4, %s2195_s16  ;;  %v446_v8 = vadd.f32 %v438_v28, %v401_v19  ;;  %v618_v15 = vsel %vm617_vm8, %v3134_v55, %v2488_v17  ;;  %v753_v48 = vsel %vm752_vm11, %v3138_v52, %v2562_v0  ;;  %v3139_v4 = vld [vmem:[#allocation35_spill] sm:$0xff]  ;;  %v2196_v27 = vmov 20  }
 0x763   : > { %v798_v17 = vsel %vm797_vm12, %v3139_v4, %v2576_v16  ;;  %v843_v53 = vsel %vm842_vm13, %v3140_v49, %v2598_v54  ;;  %vm1157_vm4 = vcmask 875520   ;;  %vm1337_vm8 = vcmask 842752  }
 0x764   : > { %v491_v58 = vadd.f32 %v483_v59, %v446_v8  ;;  %vm1382_vm9 = vcmask 834560   ;;  %vm1472_vm11 = vcmask 818176   ;;  %vm1517_vm12 = vcmask 809984  }
 0x765   : > { %vm1562_vm13 = vcmask 801792  }
 0x766   : > { %v536_v45 = vadd.f32 %v528_v63, %v491_v58 }
 0x767   : > { %v996_v2 = vpop.permute.xlu1 %995 }
 0x768   : > { %v1001_v46 = vmul.f32 %v996_v2, %v3123_v18  ;;  %v1002_v50 = vmul.f32 %v996_v2, %v2370_v14  ;;  %v1003_v10 = vmul.f32 %v996_v2, %v3125_v21  ;;  %v581_v13 = vadd.f32 %v573_v5, %v536_v45 }
 0x769   : > { %v888_v2 = vsel %vm887_vm14, %v3141_v29, %v3114_v41  ;;  %vm1607_vm14 = vcmask 793600  }
 0x76a   : > { %1018 = vrot.lane.b32.xlu1 %v1002_v50, %s2195_s16  ;;  %1016 = vrot.lane.b32.xlu0 %v1001_v46, %s2195_s16  ;;  %v626_v3 = vadd.f32 %v618_v15, %v581_v13  ;;  %v3142_v46 = vld [vmem:[#allocation39_spill] sm:$0xff] }
 0x76b   : > { %1014 = vrot.lane.b32.xlu2 %v1000_v44, %s2195_s16  ;;  %v933_v50 = vsel %vm932_vm15, %v3142_v46, %v3117_v43  ;;  %vm1652_vm15 = vcmask 785408  }
 0x76c   : > { %v671_v47 = vadd.f32 %v663_v23, %v626_v3 }
 0x76e   : > { %v716_v39 = vadd.f32 %v708_v37, %v671_v47 }
 0x770   : > { %v761_v62 = vadd.f32 %v753_v48, %v716_v39 }
 0x772   : > { %1040 = vperm.xlu1 %1978, %v2829_v57   ;;  %1036 = vperm.xlu0 %1977, %v2832_v56   ;;  %v806_v38 = vadd.f32 %v798_v17, %v761_v62  ;;  %v2200_v17 = vmov 22  }
 0x773   : > { %1020 = vrot.lane.b32.xlu2 %v1003_v10, %s2195_s16  ;;  %s1795_s16 = sshll.u32 %s2145_s12, 5 }
 0x774   : > { %v851_v0 = vadd.f32 %v843_v53, %v806_v38 }
 0x776   : > { %v896_v44 = vadd.f32 %v888_v2, %v851_v0 }
 0x778   : > { %v941_v10 = vadd.f32 %v933_v50, %v896_v44 }
 0x77a   : > { %1979 = vset.pattern.permute.xlu0 %v2196_v27  ;;  %1980 = vset.pattern.permute.xlu1 %v2196_v27  ;;  %v986_v25 = vadd.f32 %v2803_v40, %v941_v10 }
 0x7bc   : > { %v1011_v33 = vpop.permute.xlu2 %1010 }
 0x7c5   : > { %v1015_v16 = vpop.permute.xlu2 %1014 }
 0x7cd   : > { %v1021_v51 = vpop.permute.xlu2 %1020 }
 0x7d4   : > { %v1013_v20 = vpop.permute.xlu1 %1012 }
 0x7d5   : > { %v1023_v35 = vsel %vm1022_vm1, %v1011_v33, %v1013_v20  ;;  %v1024_v61 = vsel %vm1022_vm1, %v1013_v20, %v1015_v16 }
 0x7d6   : > { %v1031_v54 = vadd.f32 %v1023_v35, %v986_v25  ;;  %v1032_v42 = vadd.f32 %v1024_v61, %v2809_v22 }
 0x7dc   : > { %v1017_v30 = vpop.permute.xlu0 %1016  ;;  %v1019_v41 = vpop.permute.xlu1 %1018 }
 0x7dd   : > { %v1025_v60 = vsel %vm1022_vm1, %v1017_v30, %v1019_v41  ;;  %v1026_v11 = vsel %vm1022_vm1, %v1019_v41, %v1021_v51 }
 0x7de   : > { %v1033_v1 = vadd.f32 %v1025_v60, %v2821_v12  ;;  %v1034_v43 = vadd.f32 %v1026_v11, %v2823_v32  ;;  %v2202_v60 = vmov 23  }
 0x7e4   : > { %v1037_v9 = vpop.permute.xlu0 %1036  ;;  %v1041_v6 = vpop.permute.xlu1 %1040 }
 0x7e5   : > { %v1043_v34 = vmul.f32 %v1037_v9, %v3123_v18  ;;  %v1044_v40 = vmul.f32 %v1037_v9, %v2370_v14  ;;  %v1046_v28 = vmul.f32 %v1041_v6, %v3123_v18  ;;  %v1047_v22 = vmul.f32 %v1041_v6, %v2370_v14 }
 0x7e6   : > { %v1045_v19 = vmul.f32 %v1037_v9, %v3125_v21  ;;  %v1048_v12 = vmul.f32 %v1041_v6, %v3125_v21 }
 0x7e7   : > { %1057 = vrot.lane.b32.xlu1 %v1044_v40, %s2197_s20  ;;  %1061 = vrot.lane.b32.xlu0 %v1046_v28, %s2197_s20 }
 0x7e8   : > { %1055 = vrot.lane.b32.xlu2 %v1043_v34, %s2197_s20 }
 0x7ef   : > { %1063 = vrot.lane.b32.xlu1 %v1047_v22, %s2197_s20  ;;  %1081 = vperm.xlu0 %1979, %v2832_v56  }
 0x7f0   : > { %1059 = vrot.lane.b32.xlu2 %v1045_v19, %s2197_s20 }
 0x7f7   : > { %1085 = vperm.xlu1 %1980, %v2829_v57   ;;  %1981 = vset.pattern.permute.xlu0 %v2198_v31 }
 0x7f8   : > { %1065 = vrot.lane.b32.xlu2 %v1048_v12, %s2197_s20 }
 0x7ff   : > { %1982 = vset.pattern.permute.xlu1 %v2198_v31 }
 0x842   : > { %v1056_v32 = vpop.permute.xlu2 %1055 }
 0x84a   : > { %v1060_v59 = vpop.permute.xlu2 %1059 }
 0x852   : > { %v1066_v15 = vpop.permute.xlu2 %1065 }
 0x859   : > { %v1062_v8 = vpop.permute.xlu0 %1061  ;;  %v1058_v7 = vpop.permute.xlu1 %1057 }
 0x85a   : > { %v1068_v63 = vsel %vm1067_vm2, %v1056_v32, %v1058_v7  ;;  %v1069_v58 = vsel %vm1067_vm2, %v1058_v7, %v1060_v59 }
 0x85b   : > { %v1076_v36 = vadd.f32 %v1068_v63, %v1031_v54  ;;  %v1077_v5 = vadd.f32 %v1069_v58, %v1032_v42 }
 0x861   : > { %v1082_v45 = vpop.permute.xlu0 %1081  ;;  %v1064_v55 = vpop.permute.xlu1 %1063 }
 0x862   : > { %v1088_v13 = vmul.f32 %v1082_v45, %v3123_v18  ;;  %v1089_v24 = vmul.f32 %v1082_v45, %v2370_v14  ;;  %v1070_v23 = vsel %vm1067_vm2, %v1062_v8, %v1064_v55  ;;  %v1071_v3 = vsel %vm1067_vm2, %v1064_v55, %v1066_v15 }
 0x863   : > { %v1078_v26 = vadd.f32 %v1070_v23, %v1033_v1  ;;  %v1079_v37 = vadd.f32 %v1071_v3, %v1034_v43  ;;  %v1090_v33 = vmul.f32 %v1082_v45, %v3125_v21  ;;  %v2204_v15 = vmov 24  }
 0x864   : > { %1102 = vrot.lane.b32.xlu1 %v1089_v24, %s2199_s29  ;;  %1100 = vrot.lane.b32.xlu2 %v1088_v13, %s2199_s29 }
 0x869   : > { %v1086_v47 = vpop.permute.xlu1 %1085 }
 0x86a   : > { %v1091_v52 = vmul.f32 %v1086_v47, %v3123_v18  ;;  %v1092_v48 = vmul.f32 %v1086_v47, %v2370_v14  ;;  %v1093_v39 = vmul.f32 %v1086_v47, %v3125_v21 }
 0x86c   : > { %1108 = vrot.lane.b32.xlu1 %v1092_v48, %s2199_s29  ;;  %1106 = vrot.lane.b32.xlu0 %v1091_v52, %s2199_s29 }
 0x86d   : > { %1104 = vrot.lane.b32.xlu2 %v1090_v33, %s2199_s29 }
 0x874   : > { %1130 = vperm.xlu1 %1982, %v2829_v57   ;;  %1126 = vperm.xlu0 %1981, %v2832_v56  }
 0x875   : > { %1110 = vrot.lane.b32.xlu2 %v1093_v39, %s2199_s29 }
 0x87c   : > { %1983 = vset.pattern.permute.xlu0 %v2200_v17  ;;  %1984 = vset.pattern.permute.xlu1 %v2200_v17 }
 0x8be   : > { %v1101_v4 = vpop.permute.xlu2 %1100 }
 0x8c7   : > { %v1105_v27 = vpop.permute.xlu2 %1104 }
 0x8cf   : > { %v1111_v2 = vpop.permute.xlu2 %1110 }
 0x8d6   : > { %v1103_v62 = vpop.permute.xlu1 %1102 }
 0x8d7   : > { %v1113_v49 = vsel %vm1112_vm3, %v1101_v4, %v1103_v62  ;;  %v1114_v53 = vsel %vm1112_vm3, %v1103_v62, %v1105_v27 }
 0x8d8   : > { %v1121_v38 = vadd.f32 %v1113_v49, %v1076_v36  ;;  %v1122_v29 = vadd.f32 %v1114_v53, %v1077_v5 }
 0x8de   : > { %v1107_v0 = vpop.permute.xlu0 %1106  ;;  %v1109_v46 = vpop.permute.xlu1 %1108 }
 0x8df   : > { %v1115_v50 = vsel %vm1112_vm3, %v1107_v0, %v1109_v46  ;;  %v1116_v44 = vsel %vm1112_vm3, %v1109_v46, %v1111_v2 }
 0x8e0   : > { %v1123_v16 = vadd.f32 %v1115_v50, %v1078_v26  ;;  %v1124_v10 = vadd.f32 %v1116_v44, %v1079_v37  ;;  %v2206_v50 = vmov 25  }
 0x8e6   : > { %v1127_v25 = vpop.permute.xlu0 %1126  ;;  %v1131_v20 = vpop.permute.xlu1 %1130 }
 0x8e7   : > { %v1133_v35 = vmul.f32 %v1127_v25, %v3123_v18  ;;  %v1134_v61 = vmul.f32 %v1127_v25, %v2370_v14  ;;  %v1136_v54 = vmul.f32 %v1131_v20, %v3123_v18  ;;  %v1137_v42 = vmul.f32 %v1131_v20, %v2370_v14 }
 0x8e8   : > { %v1135_v51 = vmul.f32 %v1127_v25, %v3125_v21  ;;  %v1138_v30 = vmul.f32 %v1131_v20, %v3125_v21 }
 0x8e9   : > { %1147 = vrot.lane.b32.xlu1 %v1134_v61, %s2201_s30  ;;  %1151 = vrot.lane.b32.xlu0 %v1136_v54, %s2201_s30 }
 0x8ea   : > { %1145 = vrot.lane.b32.xlu2 %v1133_v35, %s2201_s30 }
 0x8f1   : > { %1153 = vrot.lane.b32.xlu1 %v1137_v42, %s2201_s30  ;;  %1171 = vperm.xlu0 %1983, %v2832_v56  }
 0x8f2   : > { %1149 = vrot.lane.b32.xlu2 %v1135_v51, %s2201_s30 }
 0x8f9   : > { %1175 = vperm.xlu1 %1984, %v2829_v57   ;;  %1985 = vset.pattern.permute.xlu0 %v2202_v60 }
 0x8fa   : > { %1155 = vrot.lane.b32.xlu2 %v1138_v30, %s2201_s30  ;;  %s1683_s30 = scalar_lea.hbm %s3064_s2, %s1795_s16 }
 0x8fb   : > { %s1686_s12 = sshll.u32 %s1683_s30, 4  ;;  %s1687_s12 = int_to_ptr.hbm [resolvable:$true] %s1686_s12 }
 0x901   : > { %1986 = vset.pattern.permute.xlu1 %v2202_v60 }
 0x944   : > { %v1146_v41 = vpop.permute.xlu2 %1145 }
 0x94c   : > { %v1150_v11 = vpop.permute.xlu2 %1149 }
 0x954   : > { %v1156_v19 = vpop.permute.xlu2 %1155 }
 0x95b   : > { %v1152_v1 = vpop.permute.xlu0 %1151  ;;  %v1148_v43 = vpop.permute.xlu1 %1147 }
 0x95c   : > { %v1158_v9 = vsel %vm1157_vm4, %v1146_v41, %v1148_v43  ;;  %v1159_v6 = vsel %vm1157_vm4, %v1148_v43, %v1150_v11 }
 0x95d   : > { %v1166_v34 = vadd.f32 %v1158_v9, %v1121_v38  ;;  %v1167_v40 = vadd.f32 %v1159_v6, %v1122_v29 }
 0x963   : > { %v1172_v28 = vpop.permute.xlu0 %1171  ;;  %v1154_v22 = vpop.permute.xlu1 %1153 }
 0x964   : > { %v1178_v12 = vmul.f32 %v1172_v28, %v3123_v18  ;;  %v1179_v32 = vmul.f32 %v1172_v28, %v2370_v14  ;;  %v1160_v31 = vsel %vm1157_vm4, %v1152_v1, %v1154_v22  ;;  %v1161_v59 = vsel %vm1157_vm4, %v1154_v22, %v1156_v19 }
 0x965   : > { %v1168_v8 = vadd.f32 %v1160_v31, %v1123_v16  ;;  %v1169_v7 = vadd.f32 %v1161_v59, %v1124_v10  ;;  %v1180_v5 = vmul.f32 %v1172_v28, %v3125_v21  ;;  %v2208_v19 = vmov 26  }
 0x966   : > { %1192 = vrot.lane.b32.xlu1 %v1179_v32, %s2203_s6  ;;  %1190 = vrot.lane.b32.xlu2 %v1178_v12, %s2203_s6 }
 0x96b   : > { %v1176_v63 = vpop.permute.xlu1 %1175 }
 0x96c   : > { %v1181_v58 = vmul.f32 %v1176_v63, %v3123_v18  ;;  %v1182_v36 = vmul.f32 %v1176_v63, %v2370_v14  ;;  %v1183_v45 = vmul.f32 %v1176_v63, %v3125_v21 }
 0x96e   : > { %1198 = vrot.lane.b32.xlu1 %v1182_v36, %s2203_s6  ;;  %1196 = vrot.lane.b32.xlu0 %v1181_v58, %s2203_s6 }
 0x96f   : > { %1194 = vrot.lane.b32.xlu2 %v1180_v5, %s2203_s6 }
 0x976   : > { %1220 = vperm.xlu1 %1986, %v2829_v57   ;;  %1216 = vperm.xlu0 %1985, %v2832_v56  }
 0x977   : > { %1200 = vrot.lane.b32.xlu2 %v1183_v45, %s2203_s6  ;;  %s1684_s6 = sshll.u32 %s191_s28, 4  ;;  %s1685_s6 = int_to_ptr.vmem [resolvable:$true] %s1684_s6 }
 0x97e   : > { %1987 = vset.pattern.permute.xlu0 %v2204_v15  ;;  %1988 = vset.pattern.permute.xlu1 %v2204_v15 }
 0x9c0   : > { %v1191_v55 = vpop.permute.xlu2 %1190 }
 0x9c9   : > { %v1195_v13 = vpop.permute.xlu2 %1194 }
 0x9d1   : > { %v1201_v47 = vpop.permute.xlu2 %1200 }
 0x9d8   : > { %v1193_v24 = vpop.permute.xlu1 %1192 }
 0x9d9   : > { %v1203_v23 = vsel %vm1202_vm5, %v1191_v55, %v1193_v24  ;;  %v1204_v3 = vsel %vm1202_vm5, %v1193_v24, %v1195_v13 }
 0x9da   : > { %v1211_v26 = vadd.f32 %v1203_v23, %v1166_v34  ;;  %v1212_v37 = vadd.f32 %v1204_v3, %v1167_v40 }
 0x9e0   : > { %v1197_v52 = vpop.permute.xlu0 %1196  ;;  %v1199_v48 = vpop.permute.xlu1 %1198 }
 0x9e1   : > { %v1205_v33 = vsel %vm1202_vm5, %v1197_v52, %v1199_v48  ;;  %v1206_v39 = vsel %vm1202_vm5, %v1199_v48, %v1201_v47 }
 0x9e2   : > { %v1213_v4 = vadd.f32 %v1205_v33, %v1168_v8  ;;  %v1214_v17 = vadd.f32 %v1206_v39, %v1169_v7  ;;  %v2210_v33 = vmov 27  }
 0x9e8   : > { %v1217_v27 = vpop.permute.xlu0 %1216  ;;  %v1221_v62 = vpop.permute.xlu1 %1220 }
 0x9e9   : > { %v1223_v49 = vmul.f32 %v1217_v27, %v3123_v18  ;;  %v1224_v53 = vmul.f32 %v1217_v27, %v2370_v14  ;;  %v1226_v38 = vmul.f32 %v1221_v62, %v3123_v18  ;;  %v1227_v29 = vmul.f32 %v1221_v62, %v2370_v14 }
 0x9ea   : > { %v1225_v2 = vmul.f32 %v1217_v27, %v3125_v21  ;;  %v1228_v0 = vmul.f32 %v1221_v62, %v3125_v21 }
 0x9eb   : > { %1237 = vrot.lane.b32.xlu1 %v1224_v53, %s2205_s7  ;;  %1241 = vrot.lane.b32.xlu0 %v1226_v38, %s2205_s7 }
 0x9ec   : > { %1235 = vrot.lane.b32.xlu2 %v1223_v49, %s2205_s7 }
 0x9f3   : > { %1243 = vrot.lane.b32.xlu1 %v1227_v29, %s2205_s7  ;;  %1261 = vperm.xlu0 %1987, %v2832_v56  }
 0x9f4   : > { %1239 = vrot.lane.b32.xlu2 %v1225_v2, %s2205_s7 }
 0x9fb   : > { %1265 = vperm.xlu1 %1988, %v2829_v57   ;;  %1989 = vset.pattern.permute.xlu0 %v2206_v50 }
 0x9fc   : > { %1245 = vrot.lane.b32.xlu2 %v1228_v0, %s2205_s7  ;;  %s1670_s7 = scalar_lea.sflag [#allocation4], %s2333_s24 }
 0xa03   : > { %1990 = vset.pattern.permute.xlu1 %v2206_v50 }
 0xa46   : > { %v1236_v46 = vpop.permute.xlu2 %1235 }
 0xa4e   : > { %v1240_v44 = vpop.permute.xlu2 %1239 }
 0xa56   : > { %v1246_v51 = vpop.permute.xlu2 %1245 }
 0xa5d   : > { %v1242_v16 = vpop.permute.xlu0 %1241  ;;  %v1238_v10 = vpop.permute.xlu1 %1237 }
 0xa5e   : > { %v1248_v25 = vsel %vm1247_vm6, %v1236_v46, %v1238_v10  ;;  %v1249_v20 = vsel %vm1247_vm6, %v1238_v10, %v1240_v44 }
 0xa5f   : > { %v1256_v35 = vadd.f32 %v1248_v25, %v1211_v26  ;;  %v1257_v61 = vadd.f32 %v1249_v20, %v1212_v37 }
 0xa65   : > { %v1262_v54 = vpop.permute.xlu0 %1261  ;;  %v1244_v42 = vpop.permute.xlu1 %1243 }
 0xa66   : > { %v1268_v30 = vmul.f32 %v1262_v54, %v3123_v18  ;;  %v1269_v41 = vmul.f32 %v1262_v54, %v2370_v14  ;;  %v1250_v60 = vsel %vm1247_vm6, %v1242_v16, %v1244_v42  ;;  %v1251_v11 = vsel %vm1247_vm6, %v1244_v42, %v1246_v51 }
 0xa67   : > { %v1258_v1 = vadd.f32 %v1250_v60, %v1213_v4  ;;  %v1259_v43 = vadd.f32 %v1251_v11, %v1214_v17  ;;  %v1270_v40 = vmul.f32 %v1262_v54, %v3125_v21  ;;  %v2212_v51 = vmov 28  }
 0xa68   : > { %1282 = vrot.lane.b32.xlu1 %v1269_v41, %s2207_s8  ;;  %1280 = vrot.lane.b32.xlu2 %v1268_v30, %s2207_s8 }
 0xa6d   : > { %v1266_v9 = vpop.permute.xlu1 %1265 }
 0xa6e   : > { %v1271_v6 = vmul.f32 %v1266_v9, %v3123_v18  ;;  %v1272_v34 = vmul.f32 %v1266_v9, %v2370_v14  ;;  %v1273_v28 = vmul.f32 %v1266_v9, %v3125_v21 }
 0xa70   : > { %1288 = vrot.lane.b32.xlu1 %v1272_v34, %s2207_s8  ;;  %1286 = vrot.lane.b32.xlu0 %v1271_v6, %s2207_s8 }
 0xa71   : > { %1284 = vrot.lane.b32.xlu2 %v1270_v40, %s2207_s8 }
 0xa78   : > { %1310 = vperm.xlu1 %1990, %v2829_v57   ;;  %1306 = vperm.xlu0 %1989, %v2832_v56  }
 0xa79   : > { %1290 = vrot.lane.b32.xlu2 %v1273_v28, %s2207_s8  ;;  %s2081_s8 = sshra.s32 %s1687_s12, 4  ;;  %s2082_s8 = int_to_ptr.hbm [resolvable:$true] %s2081_s8 }
 0xa7a   : > { %p2088_p10 = scmp.lt.s32.totalorder %s2082_s8, %s3064_s2 }
 0xa80   : > { %1991 = vset.pattern.permute.xlu0 %v2208_v19  ;;  %1992 = vset.pattern.permute.xlu1 %v2208_v19 }
 0xac2   : > { %v1281_v22 = vpop.permute.xlu2 %1280 }
 0xacb   : > { %v1285_v12 = vpop.permute.xlu2 %1284 }
 0xad3   : > { %v1291_v63 = vpop.permute.xlu2 %1290 }
 0xada   : > { %v1283_v32 = vpop.permute.xlu1 %1282 }
 0xadb   : > { %v1293_v31 = vsel %vm1292_vm7, %v1281_v22, %v1283_v32  ;;  %v1294_v59 = vsel %vm1292_vm7, %v1283_v32, %v1285_v12 }
 0xadc   : > { %v1301_v8 = vadd.f32 %v1293_v31, %v1256_v35  ;;  %v1302_v7 = vadd.f32 %v1294_v59, %v1257_v61 }
 0xae2   : > { %v1287_v58 = vpop.permute.xlu0 %1286  ;;  %v1289_v36 = vpop.permute.xlu1 %1288 }
 0xae3   : > { %v1295_v5 = vsel %vm1292_vm7, %v1287_v58, %v1289_v36  ;;  %v1296_v45 = vsel %vm1292_vm7, %v1289_v36, %v1291_v63 }
 0xae4   : > { %v1303_v55 = vadd.f32 %v1295_v5, %v1258_v1  ;;  %v1304_v15 = vadd.f32 %v1296_v45, %v1259_v43  ;;  %v2214_v5 = vmov 29  }
 0xaea   : > { %v1307_v13 = vpop.permute.xlu0 %1306  ;;  %v1311_v24 = vpop.permute.xlu1 %1310 }
 0xaeb   : > { %v1313_v23 = vmul.f32 %v1307_v13, %v3123_v18  ;;  %v1314_v3 = vmul.f32 %v1307_v13, %v2370_v14  ;;  %v1316_v26 = vmul.f32 %v1311_v24, %v3123_v18  ;;  %v1317_v37 = vmul.f32 %v1311_v24, %v2370_v14 }
 0xaec   : > { %v1315_v47 = vmul.f32 %v1307_v13, %v3125_v21  ;;  %v1318_v52 = vmul.f32 %v1311_v24, %v3125_v21 }
 0xaed   : > { %1327 = vrot.lane.b32.xlu1 %v1314_v3, %s2209_s17  ;;  %1331 = vrot.lane.b32.xlu0 %v1316_v26, %s2209_s17 }
 0xaee   : > { %1325 = vrot.lane.b32.xlu2 %v1313_v23, %s2209_s17 }
 0xaf5   : > { %1333 = vrot.lane.b32.xlu1 %v1317_v37, %s2209_s17  ;;  %1351 = vperm.xlu0 %1991, %v2832_v56  }
 0xaf6   : > { %1329 = vrot.lane.b32.xlu2 %v1315_v47, %s2209_s17 }
 0xafd   : > { %1355 = vperm.xlu1 %1992, %v2829_v57   ;;  %1993 = vset.pattern.permute.xlu0 %v2210_v33 }
 0xafe   : > { %1335 = vrot.lane.b32.xlu2 %v1318_v52, %s2209_s17  ;;  %s2083_s17 = scalar_lea.hbm %s2082_s8, 32 }
 0xaff   : > { %p2084_p1 = scmp.ne.s32.totalorder %s2082_s8, %s2083_s17 }
 0xb01   : > { %p2085_p3 = pnand %p2084_p1, %p2311_p4 }
 0xb03   : > { %p2086_p8 = pneg %p2085_p3 }
 0xb05   : > { %1994 = vset.pattern.permute.xlu1 %v2210_v33 }
 0xb48   : > { %v1326_v48 = vpop.permute.xlu2 %1325 }
 0xb50   : > { %v1330_v39 = vpop.permute.xlu2 %1329 }
 0xb58   : > { %v1336_v2 = vpop.permute.xlu2 %1335 }
 0xb5f   : > { %v1332_v4 = vpop.permute.xlu0 %1331  ;;  %v1328_v17 = vpop.permute.xlu1 %1327 }
 0xb60   : > { %v1338_v27 = vsel %vm1337_vm8, %v1326_v48, %v1328_v17  ;;  %v1339_v62 = vsel %vm1337_vm8, %v1328_v17, %v1330_v39 }
 0xb61   : > { %v1346_v49 = vadd.f32 %v1338_v27, %v1301_v8  ;;  %v1347_v53 = vadd.f32 %v1339_v62, %v1302_v7 }
 0xb67   : > { %v1352_v38 = vpop.permute.xlu0 %1351  ;;  %v1334_v29 = vpop.permute.xlu1 %1333 }
 0xb68   : > { %v1358_v0 = vmul.f32 %v1352_v38, %v3123_v18  ;;  %v1359_v46 = vmul.f32 %v1352_v38, %v2370_v14  ;;  %v1340_v50 = vsel %vm1337_vm8, %v1332_v4, %v1334_v29  ;;  %v1341_v44 = vsel %vm1337_vm8, %v1334_v29, %v1336_v2 }
 0xb69   : > { %v1348_v16 = vadd.f32 %v1340_v50, %v1303_v55  ;;  %v1349_v10 = vadd.f32 %v1341_v44, %v1304_v15  ;;  %v1360_v61 = vmul.f32 %v1352_v38, %v3125_v21  ;;  %v2216_v2 = vmov 30  }
 0xb6a   : > { %1372 = vrot.lane.b32.xlu1 %v1359_v46, %s2211_s15  ;;  %1370 = vrot.lane.b32.xlu2 %v1358_v0, %s2211_s15 }
 0xb6f   : > { %v1356_v25 = vpop.permute.xlu1 %1355 }
 0xb70   : > { %v1361_v20 = vmul.f32 %v1356_v25, %v3123_v18  ;;  %v1362_v35 = vmul.f32 %v1356_v25, %v2370_v14  ;;  %v1363_v54 = vmul.f32 %v1356_v25, %v3125_v21  ;;  %v2217_v25 = vmov 31  }
 0xb71   : > { %2001 = vset.pattern.permute.xlu2 %v2217_v25 }
 0xb72   : > { %1378 = vrot.lane.b32.xlu1 %v1362_v35, %s2211_s15  ;;  %1376 = vrot.lane.b32.xlu0 %v1361_v20, %s2211_s15 }
 0xb73   : > { %1374 = vrot.lane.b32.xlu2 %v1360_v61, %s2211_s15 }
 0xb7a   : > { %1400 = vperm.xlu1 %1994, %v2829_v57   ;;  %1396 = vperm.xlu0 %1993, %v2832_v56  }
 0xb7b   : > { %1380 = vrot.lane.b32.xlu2 %v1363_v54, %s2211_s15 }
 0xb82   : > { %1995 = vset.pattern.permute.xlu0 %v2212_v51  ;;  %1996 = vset.pattern.permute.xlu1 %v2212_v51 }
 0xbc4   : > { %v1371_v42 = vpop.permute.xlu2 %1370 }
 0xbcd   : > { %v1375_v30 = vpop.permute.xlu2 %1374 }
 0xbd5   : > { %v1381_v9 = vpop.permute.xlu2 %1380 }
 0xbdc   : > { %v1373_v41 = vpop.permute.xlu1 %1372 }
 0xbdd   : > { %v1383_v60 = vsel %vm1382_vm9, %v1371_v42, %v1373_v41  ;;  %v1384_v11 = vsel %vm1382_vm9, %v1373_v41, %v1375_v30 }
 0xbde   : > { %v1391_v1 = vadd.f32 %v1383_v60, %v1346_v49  ;;  %v1392_v43 = vadd.f32 %v1384_v11, %v1347_v53 }
 0xbe4   : > { %v1377_v6 = vpop.permute.xlu0 %1376  ;;  %v1379_v34 = vpop.permute.xlu1 %1378 }
 0xbe5   : > { %v1385_v40 = vsel %vm1382_vm9, %v1377_v6, %v1379_v34  ;;  %v1386_v28 = vsel %vm1382_vm9, %v1379_v34, %v1381_v9 }
 0xbe6   : > { %v1393_v22 = vadd.f32 %v1385_v40, %v1348_v16  ;;  %v1394_v19 = vadd.f32 %v1386_v28, %v1349_v10  ;;  %v2219_v40 = vmov 32  }
 0xbec   : > { %v1397_v12 = vpop.permute.xlu0 %1396  ;;  %v1401_v32 = vpop.permute.xlu1 %1400 }
 0xbed   : > { %v1403_v31 = vmul.f32 %v1397_v12, %v3123_v18  ;;  %v1404_v59 = vmul.f32 %v1397_v12, %v2370_v14  ;;  %v1406_v8 = vmul.f32 %v1401_v32, %v3123_v18  ;;  %v1407_v7 = vmul.f32 %v1401_v32, %v2370_v14 }
 0xbee   : > { %v1405_v63 = vmul.f32 %v1397_v12, %v3125_v21  ;;  %v1408_v58 = vmul.f32 %v1401_v32, %v3125_v21 }
 0xbef   : > { %1417 = vrot.lane.b32.xlu1 %v1404_v59, %s2213_s18  ;;  %1421 = vrot.lane.b32.xlu0 %v1406_v8, %s2213_s18 }
 0xbf0   : > { %1415 = vrot.lane.b32.xlu2 %v1403_v31, %s2213_s18 }
 0xbf7   : > { %1423 = vrot.lane.b32.xlu1 %v1407_v7, %s2213_s18  ;;  %1441 = vperm.xlu0 %1995, %v2832_v56  }
 0xbf8   : > { %1419 = vrot.lane.b32.xlu2 %v1405_v63, %s2213_s18 }
 0xbff   : > { %1445 = vperm.xlu1 %1996, %v2829_v57   ;;  %1997 = vset.pattern.permute.xlu0 %v2214_v5 }
 0xc00   : > { %1425 = vrot.lane.b32.xlu2 %v1408_v58, %s2213_s18 }
 0xc07   : > { %1998 = vset.pattern.permute.xlu1 %v2214_v5 }
 0xc4a   : > { %v1416_v36 = vpop.permute.xlu2 %1415 }
 0xc52   : > { %v1420_v45 = vpop.permute.xlu2 %1419 }
 0xc5a   : > { %v1426_v47 = vpop.permute.xlu2 %1425 }
 0xc61   : > { %v1422_v55 = vpop.permute.xlu0 %1421  ;;  %v1418_v15 = vpop.permute.xlu1 %1417 }
 0xc62   : > { %v1428_v13 = vsel %vm1427_vm10, %v1416_v36, %v1418_v15  ;;  %v1429_v24 = vsel %vm1427_vm10, %v1418_v15, %v1420_v45 }
 0xc63   : > { %v1436_v23 = vadd.f32 %v1428_v13, %v1391_v1  ;;  %v1437_v3 = vadd.f32 %v1429_v24, %v1392_v43 }
 0xc69   : > { %v1442_v26 = vpop.permute.xlu0 %1441  ;;  %v1424_v37 = vpop.permute.xlu1 %1423 }
 0xc6a   : > { %v1448_v52 = vmul.f32 %v1442_v26, %v3123_v18  ;;  %v1449_v48 = vmul.f32 %v1442_v26, %v2370_v14  ;;  %v1430_v33 = vsel %vm1427_vm10, %v1422_v55, %v1424_v37  ;;  %v1431_v39 = vsel %vm1427_vm10, %v1424_v37, %v1426_v47 }
 0xc6b   : > { %v1438_v4 = vadd.f32 %v1430_v33, %v1393_v22  ;;  %v1439_v17 = vadd.f32 %v1431_v39, %v1394_v19  ;;  %v1450_v53 = vmul.f32 %v1442_v26, %v3125_v21 }
 0xc6c   : > { %1462 = vrot.lane.b32.xlu1 %v1449_v48, %s2215_s19  ;;  %1460 = vrot.lane.b32.xlu2 %v1448_v52, %s2215_s19 }
 0xc71   : > { %v1446_v27 = vpop.permute.xlu1 %1445 }
 0xc72   : > { %v1451_v62 = vmul.f32 %v1446_v27, %v3123_v18  ;;  %v1452_v49 = vmul.f32 %v1446_v27, %v2370_v14  ;;  %v1453_v38 = vmul.f32 %v1446_v27, %v3125_v21 }
 0xc74   : > { %1468 = vrot.lane.b32.xlu1 %v1452_v49, %s2215_s19  ;;  %1466 = vrot.lane.b32.xlu0 %v1451_v62, %s2215_s19 }
 0xc75   : > { %1464 = vrot.lane.b32.xlu2 %v1450_v53, %s2215_s19 }
 0xc7c   : > { %1490 = vperm.xlu1 %1998, %v2829_v57   ;;  %1486 = vperm.xlu0 %1997, %v2832_v56  }
 0xc7d   : > { %1470 = vrot.lane.b32.xlu2 %v1453_v38, %s2215_s19  ;;  %s2087_s19 = scalar_lea.hbm %s3064_s2, 64 }
 0xc7e   : > { %p2089_p11 = scmp.lt.s32.totalorder %s2087_s19, %s2083_s17 }
 0xc80   : > { %p2090_p12 = por %p2089_p11, %p2088_p10 }
 0xc82   : > { %p2091_p13 = pnand %p2090_p12, %p2086_p8 }
 0xc84   : > { %1999 = vset.pattern.permute.xlu0 %v2216_v2  ;;  %2000 = vset.pattern.permute.xlu1 %v2216_v2 }
 0xcc6   : > { %v1461_v29 = vpop.permute.xlu2 %1460 }
 0xccf   : > { %v1465_v0 = vpop.permute.xlu2 %1464 }
 0xcd7   : > { %v1471_v20 = vpop.permute.xlu2 %1470 }
 0xcde   : > { %v1463_v46 = vpop.permute.xlu1 %1462 }
 0xcdf   : > { %v1473_v50 = vsel %vm1472_vm11, %v1461_v29, %v1463_v46  ;;  %v1474_v44 = vsel %vm1472_vm11, %v1463_v46, %v1465_v0 }
 0xce0   : > { %v1481_v16 = vadd.f32 %v1473_v50, %v1436_v23  ;;  %v1482_v10 = vadd.f32 %v1474_v44, %v1437_v3 }
 0xce6   : > { %v1467_v35 = vpop.permute.xlu0 %1466  ;;  %v1469_v61 = vpop.permute.xlu1 %1468 }
 0xce7   : > { %v1475_v54 = vsel %vm1472_vm11, %v1467_v35, %v1469_v61  ;;  %v1476_v42 = vsel %vm1472_vm11, %v1469_v61, %v1471_v20 }
 0xce8   : > { %v1483_v51 = vadd.f32 %v1475_v54, %v1438_v4  ;;  %v1484_v30 = vadd.f32 %v1476_v42, %v1439_v17 }
 0xcee   : > { %v1487_v41 = vpop.permute.xlu0 %1486  ;;  %v1491_v60 = vpop.permute.xlu1 %1490 }
 0xcef   : > { %v1493_v11 = vmul.f32 %v1487_v41, %v3123_v18  ;;  %v1494_v1 = vmul.f32 %v1487_v41, %v2370_v14  ;;  %v1496_v43 = vmul.f32 %v1491_v60, %v3123_v18  ;;  %v1495_v9 = vmul.f32 %v1487_v41, %v3125_v21 }
 0xcf0   : > { %v1497_v6 = vmul.f32 %v1491_v60, %v2370_v14  ;;  %v1498_v34 = vmul.f32 %v1491_v60, %v3125_v21 }
 0xcf1   : > { %1507 = vrot.lane.b32.xlu1 %v1494_v1, %s2218_s21  ;;  %1511 = vrot.lane.b32.xlu0 %v1496_v43, %s2218_s21 }
 0xcf2   : > { %1505 = vrot.lane.b32.xlu2 %v1493_v11, %s2218_s21 }
 0xcf9   : > { %1513 = vrot.lane.b32.xlu1 %v1497_v6, %s2218_s21  ;;  %1531 = vperm.xlu0 %1999, %v2832_v56  }
 0xcfa   : > { %1509 = vrot.lane.b32.xlu2 %v1495_v9, %s2218_s21 }
 0xd01   : > { %1535 = vperm.xlu1 %2000, %v2829_v57   ;;  %2004 = vset.pattern.permute.xlu0 %v2219_v40 }
 0xd02   : > { %1515 = vrot.lane.b32.xlu2 %v1498_v34, %s2218_s21  ;;  %1625 = vperm.xlu0 %2004, %v2829_v57  }
 0xd09   : > { %2002 = vset.pattern.permute.xlu1 %v2217_v25 }
 0xd0a   : > { %1580 = vperm.xlu1 %2002, %v2829_v57   ;;  %1576 = vperm.xlu2 %2001, %v2832_v56  }
 0xd12   : > { %2003 = vset.pattern.permute.xlu2 %v2219_v40 }
 0xd13   : > { %1621 = vperm.xlu2 %2003, %v2832_v56  }
 0xd4c   : > { %v1506_v28 = vpop.permute.xlu2 %1505 }
 0xd54   : > { %v1510_v22 = vpop.permute.xlu2 %1509 }
 0xd5c   : > { %v1516_v58 = vpop.permute.xlu2 %1515 }
 0xd63   : > { %v1512_v19 = vpop.permute.xlu0 %1511  ;;  %v1508_v12 = vpop.permute.xlu1 %1507 }
 0xd64   : > { %v1518_v32 = vsel %vm1517_vm12, %v1506_v28, %v1508_v12  ;;  %v1519_v31 = vsel %vm1517_vm12, %v1508_v12, %v1510_v22  ;;  %v1577_v3 = vpop.permute.xlu2 %1576 }
 0xd65   : > { %v2981_v59 = vadd.f32 %v1518_v32, %v1481_v16  ;;  %v2983_v8 = vadd.f32 %v1519_v31, %v1482_v10  ;;  %v1584_v37 = vmul.f32 %v1577_v3, %v2370_v14  ;;  %v1583_v47 = vmul.f32 %v1577_v3, %v3123_v18 }
 0xd66   : > { %v1585_v48 = vmul.f32 %v1577_v3, %v3125_v21 }
 0xd6b   : > { %v1532_v7 = vpop.permute.xlu0 %1531  ;;  %v1514_v63 = vpop.permute.xlu1 %1513 }
 0xd6c   : > { %v1538_v57 = vmul.f32 %v1532_v7, %v3123_v18  ;;  %v1539_v36 = vmul.f32 %v1532_v7, %v2370_v14  ;;  %v1520_v5 = vsel %vm1517_vm12, %v1512_v19, %v1514_v63  ;;  %v1521_v56 = vsel %vm1517_vm12, %v1514_v63, %v1516_v58 }
 0xd6d   : > { %v2987_v45 = vadd.f32 %v1520_v5, %v1483_v51  ;;  %v2989_v55 = vadd.f32 %v1521_v56, %v1484_v30  ;;  %v1540_v13 = vmul.f32 %v1532_v7, %v3125_v21  ;;  %v1622_v4 = vpop.permute.xlu2 %1621 }
 0xd6e   : > { %1550 = vrot.lane.b32.xlu1 %v1538_v57, %s2220_s22  ;;  %1552 = vrot.lane.b32.xlu2 %v1539_v36, %s2220_s22  ;;  %v1629_v27 = vmul.f32 %v1622_v4, %v2370_v14  ;;  %v1628_v62 = vmul.f32 %v1622_v4, %v3123_v18  ;;  %v1630_v53 = vmul.f32 %v1622_v4, %v3125_v21 }
 0xd73   : > { %v1536_v15 = vpop.permute.xlu1 %1535 }
 0xd74   : > { %v1541_v24 = vmul.f32 %v1536_v15, %v3123_v18  ;;  %v1542_v23 = vmul.f32 %v1536_v15, %v2370_v14  ;;  %v1543_v26 = vmul.f32 %v1536_v15, %v3125_v21  ;;  %v1626_v49 = vpop.permute.xlu0 %1625 }
 0xd75   : > { %v1632_v38 = vmul.f32 %v1626_v49, %v2370_v14  ;;  %v1631_v29 = vmul.f32 %v1626_v49, %v3123_v18  ;;  %v1633_v2 = vmul.f32 %v1626_v49, %v3125_v21 }
 0xd76   : > { %1554 = vrot.lane.b32.xlu1 %v1540_v13, %s2220_s22  ;;  %1558 = vrot.lane.b32.xlu0 %v1542_v23, %s2220_s22 }
 0xd77   : > { %1556 = vrot.lane.b32.xlu2 %v1541_v24, %s2220_s22 }
 0xd7c   : > { %v1581_v52 = vpop.permute.xlu1 %1580 }
 0xd7d   : > { %v1587_v33 = vmul.f32 %v1581_v52, %v2370_v14  ;;  %v1586_v39 = vmul.f32 %v1581_v52, %v3123_v18  ;;  %v1588_v17 = vmul.f32 %v1581_v52, %v3125_v21 }
 0xd7e   : > { %1560 = vrot.lane.b32.xlu1 %v1543_v26, %s2220_s22  ;;  %1597 = vrot.lane.b32.xlu0 %v1584_v37, %s2221_s23 }
 0xd7f   : > { %1595 = vrot.lane.b32.xlu2 %v1583_v47, %s2221_s23 }
 0xd86   : > { %1599 = vrot.lane.b32.xlu1 %v1585_v48, %s2221_s23  ;;  %1603 = vrot.lane.b32.xlu0 %v1587_v33, %s2221_s23 }
 0xd87   : > { %1601 = vrot.lane.b32.xlu2 %v1586_v39, %s2221_s23 }
 0xd8e   : > { %1605 = vrot.lane.b32.xlu1 %v1588_v17, %s2221_s23  ;;  %1642 = vrot.lane.b32.xlu0 %v1629_v27, %s2222_s25 }
 0xd8f   : > { %1640 = vrot.lane.b32.xlu2 %v1628_v62, %s2222_s25 }
 0xd96   : > { %1644 = vrot.lane.b32.xlu1 %v1630_v53, %s2222_s25  ;;  %1648 = vrot.lane.b32.xlu0 %v1632_v38, %s2222_s25 }
 0xd97   : > { %1646 = vrot.lane.b32.xlu2 %v1631_v29, %s2222_s25 }
 0xd9e   : > { %1650 = vrot.lane.b32.xlu1 %v1633_v2, %s2222_s25 }
 0xdc8   : > { %v1553_v0 = vpop.permute.xlu2 %1552 }
 0xdd1   : > { %v1557_v46 = vpop.permute.xlu2 %1556 }
 0xdd9   : > { %v1596_v10 = vpop.permute.xlu2 %1595 }
 0xde0   : > { %v1551_v50 = vpop.permute.xlu1 %1550 }
 0xde1   : > { %v1602_v35 = vpop.permute.xlu2 %1601  ;;  %v1563_v18 = vsel %vm1562_vm13, %v1551_v50, %v1553_v0 }
 0xde2   : > { %v1571_v42 = vadd.f32 %v1563_v18, %v2981_v59 }
 0xde8   : > { %v1559_v44 = vpop.permute.xlu0 %1558  ;;  %v1555_v16 = vpop.permute.xlu1 %1554 }
 0xde9   : > { %v1641_v21 = vpop.permute.xlu2 %1640  ;;  %v1565_v1 = vsel %vm1562_vm13, %v1557_v46, %v1559_v44  ;;  %v1564_v43 = vsel %vm1562_vm13, %v1553_v0, %v1555_v16 }
 0xdea   : > { %v1573_v34 = vadd.f32 %v1565_v1, %v2987_v45  ;;  %v1572_v40 = vadd.f32 %v1564_v43, %v2983_v8 }
 0xdf0   : > { %v1561_v25 = vpop.permute.xlu1 %1560  ;;  %v1598_v20 = vpop.permute.xlu0 %1597 }
 0xdf1   : > { %v1608_v54 = vsel %vm1607_vm14, %v1596_v10, %v1598_v20  ;;  %v1647_v28 = vpop.permute.xlu2 %1646  ;;  %v1566_v58 = vsel %vm1562_vm13, %v1559_v44, %v1561_v25 }
 0xdf2   : > { %v1616_v51 = vadd.f32 %v1608_v54, %v1571_v42  ;;  %v1574_v57 = vadd.f32 %v1566_v58, %v2989_v55 }
 0xdf8   : > { %v1600_v14 = vpop.permute.xlu1 %1599  ;;  %v1604_v61 = vpop.permute.xlu0 %1603 }
 0xdf9   : > { %v1609_v9 = vsel %vm1607_vm14, %v1598_v20, %v1600_v14  ;;  %v1610_v6 = vsel %vm1607_vm14, %v1602_v35, %v1604_v61 }
 0xdfa   : > { %v1617_v22 = vadd.f32 %v1609_v9, %v1572_v40  ;;  %v1618_v19 = vadd.f32 %v1610_v6, %v1573_v34 }
 0xe00   : > { %v1606_v30 = vpop.permute.xlu1 %1605  ;;  %v1643_v41 = vpop.permute.xlu0 %1642 }
 0xe01   : > { %v1653_v60 = vsel %vm1652_vm15, %v1641_v21, %v1643_v41  ;;  %v1611_v8 = vsel %vm1607_vm14, %v1604_v61, %v1606_v30 }
 0xe02   : > { %v1661_v11 = vadd.f32 %v1653_v60, %v1616_v51  ;;  %v1619_v36 = vadd.f32 %v1611_v8, %v1574_v57 }
 0xe04   : > { %1665 = vst [vmem:[%s191_s28] sm:$0xff] %v1661_v11 }
 0xe08   : > { %v1645_v12 = vpop.permute.xlu1 %1644  ;;  %v1649_v32 = vpop.permute.xlu0 %1648 }
 0xe09   : > { %v1654_v31 = vsel %vm1652_vm15, %v1643_v41, %v1645_v12  ;;  %v1655_v59 = vsel %vm1652_vm15, %v1647_v28, %v1649_v32 }
 0xe0a   : > { %v1662_v7 = vadd.f32 %v1654_v31, %v1617_v22  ;;  %v1663_v63 = vadd.f32 %v1655_v59, %v1618_v19 }
 0xe0c   : > { %1666 = vst [vmem:[%s191_s28 + $0x8] sm:$0xff] %v1662_v7 }
 0xe0d   : > { %1667 = vst [vmem:[%s191_s28 + $0x10] sm:$0xff] %v1663_v63 }
 0xe10   : > { %v1651_v5 = vpop.permute.xlu1 %1650 }
 0xe11   : > { %v1656_v56 = vsel %vm1652_vm15, %v1649_v32, %v1651_v5 }
 0xe12   : > { %v1664_v45 = vadd.f32 %v1656_v56, %v1619_v36 }
 0xe14   : > { %1668 = vst [vmem:[%s191_s28 + $0x18] sm:$0xff] %v1664_v45 }
 0xe15   : > { %2094 = shalt.err (!%p2091_p13)
}
 0xe16   : > { %s2223_s24 = smov 256   ;;  %s2224_s23 = smov 16  }
 0xe17   : > { %1805 = dma.vmem_to_hbm [thread:$0]  (%p2311_p4), %s1685_s6, 512, %s1687_s12, %s1670_s7, %s2223_s24, %s2223_s24, %s2224_s23  }
 0xe18 PF: > { %s1701_s25 = sand.u32 1, %s2133_s9   ;;  %p1816_p0 = pnand %p1786_p6, %p2319_p7 }
 0xe19   : > { %s1702_s27 = scalar_lea.sflag [#allocation4], %s1701_s25 }
 0xe1a   : > { %p1817_p2 = pneg %p1816_p0 }
 0xe1c   : > { %2128 = dma.done.wait (%p1817_p2), %s1702_s27, 512  }
 0xe1d   : > { %2130 = vsyncadd (%p1817_p2), %s1702_s27, 4294966784  ;;  %s19_s14 = sadd.s32 1, %s2153_s14   ;;  %s3143_s9 = smov %s2137_s10 }
 0xe1e   : > { %p16_p5 = scmp.ge.s32.totalorder %s19_s14, 4   ;;  %s3144_s10 = smov %s2141_s11 }
 0xe1f   : > { %s3145_s11 = smov %s2317_s4  ;;  %s3146_s12 = smov %s2149_s13 }
 0xe20   : > { %s3147_s13 = smov %s3149_s26  ;;  %18 = sbr.rel (!%p16_p5) target bundleno = 7 (0x7), region = 78 }
 0xe25   :  { %1708 = vsyncpa [#allocation3], 1 }
 0xe26   :  { %1710 = vsyncpa [#allocation3 + $0x1], 1 }
 0xe27   :  { %1711 = vsyncpa [#allocation6], 1 }
 0xe28   :  { %1712 = vsyncpa [#allocation4], 1 }
 0xe29   :  { %1714 = vsyncpa [#allocation4 + $0x1], 1 }

</bundles_post_ra>
